<compile_context>
chip_gen: v6e
topology: v6e:2x2x1
jax: 0.10.0
libtpu: 0.0.40
codegen_flags: <defaults>
</compile_context>

<pallas_src>
import jax
import jax.numpy as jnp
from jax import lax
from jax.experimental import pallas as pl
from jax.experimental.pallas import tpu as pltpu
import numpy as np


def _im2col_3x3(x):
    """x: (Hs, Ws, C) -> (Hs*Ws, 9*C) patches of a 3x3 'same' conv (zero padding).

    Column ordering: index ((dy*3 + dx) * C + ci), matching the weight flattening
    done in the wrapper.  Only leading/sublane reshapes (minor dim C unchanged).
    """
    Hs, Ws, C = x.shape
    zrow = jnp.zeros((1, Ws, C), x.dtype)
    xp = jnp.concatenate([zrow, x, zrow], axis=0)            # (Hs+2, Ws, C)
    zcol = jnp.zeros((Hs + 2, 1, C), x.dtype)
    xp = jnp.concatenate([zcol, xp, zcol], axis=1)           # (Hs+2, Ws+2, C)
    cols = jnp.concatenate(
        [xp[dy:dy + Hs, dx:dx + Ws, :] for dy in range(3) for dx in range(3)],
        axis=-1,
    )                                                        # (Hs, Ws, 9*C)
    return cols.reshape(Hs * Ws, 9 * C)


def down_kernel(x_ref, w1_ref, b1_ref, w2_ref, b2_ref, o_ref):
    x = x_ref[0]                          # (H, W, Cp) for this batch element
    H, W, Cp = x.shape
    Hh, Wh = H // 2, W // 2

    # --- MaxPool2d(kernel_size=2, stride=2): blocked reshape + max ---
    xw = x.reshape(H, Wh, 2, Cp)                             # split W into (Wh, 2)
    xw = jnp.maximum(xw[:, :, 0, :], xw[:, :, 1, :])         # (H, Wh, Cp)
    xh = xw.reshape(Hh, 2, Wh, Cp)                           # split H into (Hh, 2)
    p = jnp.maximum(xh[:, 0, :, :], xh[:, 1, :, :])          # (Hh, Wh, Cp)

    # --- conv1 (BN1 scale folded into weights) + bias + ReLU ---
    cols1 = _im2col_3x3(p)                                   # (Hh*Wh, 9*Cp)
    h1 = jnp.dot(cols1, w1_ref[...],
                 preferred_element_type=jnp.float32)         # (Hh*Wh, Cmid)
    h1 = jnp.maximum(h1 + b1_ref[...], 0.0)
    h1 = h1.reshape(Hh, Wh, -1)                              # (Hh, Wh, Cmid)

    # --- conv2 (BN2 scale folded) + bias + ReLU, produced channel-major ---
    # (Cout, 9*Cmid) contracted against (Hh*Wh, 9*Cmid) on the last dims gives
    # (Cout, Hh*Wh): a pixel-minor (lane-dense) result written straight out.
    cols2 = _im2col_3x3(h1)                                  # (Hh*Wh, 9*Cmid)
    y2 = lax.dot_general(
        w2_ref[...], cols2,
        dimension_numbers=(((1,), (1,)), ((), ())),
        preferred_element_type=jnp.float32)                  # (Cout, Hh*Wh)
    y2 = jnp.maximum(y2 + b2_ref[...], 0.0)

    o_ref[0] = y2.astype(o_ref.dtype)


def down_forward(x_nchw, w1, w2, bn1_scale, bn1_bias, bn2_scale, bn2_bias):
    """x_nchw: (N, Cin, H, W) float32 (PyTorch layout).
       w1: (Cmid, Cin, 3, 3), w2: (Cout, Cmid, 3, 3)  (PyTorch OIHW, bias=False).
       bn*_scale / bn*_bias: folded eval-mode BatchNorm per-channel affine.
       Returns (N, Cout, H//2, W//2) (NCHW)."""
    N, Cin, H, W = x_nchw.shape
    Cmid = w1.shape[0]
    Cout = w2.shape[0]
    assert H % 2 == 0 and W % 2 == 0, "MaxPool2d(2) expects even spatial dims"
    Hh, Wh = H // 2, W // 2

    # Pad Cin up to a multiple of 8 so the conv1 contraction dim is sublane-aligned.
    Cp = ((Cin + 7) // 8) * 8

    # NCHW -> NHWC (channel-minor for in-kernel im2col), zero-pad channels.
    x_nhwc = jnp.transpose(x_nchw, (0, 2, 3, 1))
    if Cp != Cin:
        x_nhwc = jnp.pad(x_nhwc, ((0, 0), (0, 0), (0, 0), (0, Cp - Cin)))

    # Fold BN scale into the conv weights (output-channel axis of OIHW).
    w1p = jnp.pad(w1, ((0, 0), (0, Cp - Cin), (0, 0), (0, 0)))        # (Cmid, Cp, 3, 3)
    w1s = w1p * bn1_scale[:, None, None, None]
    w2s = w2 * bn2_scale[:, None, None, None]

    # conv1 weights in im2col layout: index ((dy*3+dx)*Cp + ci, co)
    w1_flat = jnp.transpose(w1s, (2, 3, 1, 0)).reshape(9 * Cp, Cmid)  # (9*Cp, Cmid)
    # conv2 weights pre-transposed for the (Cout, P) output form:
    # index (co, (dy*3+dx)*Cmid + ci)
    w2t = jnp.transpose(w2s, (0, 2, 3, 1)).reshape(Cout, 9 * Cmid)    # (Cout, 9*Cmid)

    b1 = bn1_bias.reshape(1, Cmid)     # broadcast against (P, Cmid)
    b2 = bn2_bias.reshape(Cout, 1)     # broadcast against (Cout, P)

    out = pl.pallas_call(
        down_kernel,
        out_shape=jax.ShapeDtypeStruct((N, Cout, Hh * Wh), x_nchw.dtype),
        grid_spec=pltpu.PrefetchScalarGridSpec(
            num_scalar_prefetch=0,
            grid=(N,),
            in_specs=[
                pl.BlockSpec((1, H, W, Cp), lambda n: (n, 0, 0, 0)),
                pl.BlockSpec((9 * Cp, Cmid), lambda n: (0, 0)),
                pl.BlockSpec((1, Cmid), lambda n: (0, 0)),
                pl.BlockSpec((Cout, 9 * Cmid), lambda n: (0, 0)),
                pl.BlockSpec((Cout, 1), lambda n: (0, 0)),
            ],
            out_specs=pl.BlockSpec((1, Cout, Hh * Wh), lambda n: (n, 0, 0)),
        ),
        compiler_params=pltpu.CompilerParams(
            # batch axis parallel -> both TensorCores used on dual-TC chips (v7x)
            dimension_semantics=("parallel",),
        ),
    )(x_nhwc, w1_flat, b1, w2t, b2)

    # (N, Cout, Hh*Wh) -> NCHW; pure metadata reshape, no transpose needed.
    return out.reshape(N, Cout, Hh, Wh)


def _reference_down(x_nchw, w1, w2, s1, b1, s2, b2):
    """Pure-JAX NCHW reference for correctness checking."""
    p = lax.reduce_window(x_nchw, -jnp.inf, lax.max,
                          window_dimensions=(1, 1, 2, 2),
                          window_strides=(1, 1, 2, 2),
                          padding="VALID")

    def conv(inp, w, s, b):
        y = lax.conv_general_dilated(
            inp, w, window_strides=(1, 1), padding="SAME",
            dimension_numbers=("NCHW", "OIHW", "NCHW"))
        y = y * s[None, :, None, None] + b[None, :, None, None]
        return jnp.maximum(y, 0.0)

    h = conv(p, w1, s1, b1)
    return conv(h, w2, s2, b2)


if __name__ == "__main__":
    # Small shapes consistent with the module: batch=2, in_channels=4, out_channels=8, 16x16 spatial.
    N, Cin, Cout, H, W = 2, 4, 8, 16, 16
    Cmid = Cout  # DoubleConv: mid_channels = out_channels

    key = jax.random.PRNGKey(0)
    kx, kw1, kw2 = jax.random.split(key, 3)

    # PyTorch-native NCHW input
    x_nchw = jax.random.normal(kx, (N, Cin, H, W), dtype=jnp.float32)

    # Conv weights, PyTorch OIHW layout, bias=False (deterministic init)
    w1 = 0.1 * jax.random.normal(kw1, (Cmid, Cin, 3, 3), dtype=jnp.float32)
    w2 = 0.1 * jax.random.normal(kw2, (Cout, Cmid, 3, 3), dtype=jnp.float32)

    # BatchNorm folded in eval mode with default init:
    # gamma=1, beta=0, running_mean=0, running_var=1, eps=1e-5
    eps = 1e-5
    bn1_scale = jnp.ones((Cmid,), jnp.float32) / jnp.sqrt(1.0 + eps)
    bn1_bias = jnp.zeros((Cmid,), jnp.float32)
    bn2_scale = jnp.ones((Cout,), jnp.float32) / jnp.sqrt(1.0 + eps)
    bn2_bias = jnp.zeros((Cout,), jnp.float32)
    # TODO(synk): training-mode BatchNorm (batch statistics) not folded; eval-mode running stats used.

    out = down_forward(x_nchw, w1, w2, bn1_scale, bn1_bias, bn2_scale, bn2_bias)
    out = jax.block_until_ready(out)

    ref = _reference_down(x_nchw, w1, w2, bn1_scale, bn1_bias, bn2_scale, bn2_bias)
    ref = jax.block_until_ready(ref)

    assert out.shape == (N, Cout, H // 2, W // 2), out.shape
    np.testing.assert_allclose(np.asarray(out), np.asarray(ref), atol=1e-4, rtol=1e-4)

    print("KERNEL_OK")
</pallas_src>

<mosaic_0001>
module attributes {stable_mosaic.version = 11 : i64} {
  func.func @down_kernel(%arg0: i32, %arg1: memref<1x16x16x8xf32, #tpu.memory_space<vmem>>, %arg2: memref<72x8xf32, #tpu.memory_space<vmem>>, %arg3: memref<1x8xf32, #tpu.memory_space<vmem>>, %arg4: memref<8x72xf32, #tpu.memory_space<vmem>>, %arg5: memref<8x1xf32, #tpu.memory_space<vmem>>, %arg6: memref<1x8x64xf32, #tpu.memory_space<vmem>>) attributes {dimension_semantics = [#tpu.dimension_semantics<parallel>], iteration_bounds = array<i64: 2>, scalar_prefetch = 0 : i64, scratch_operands = 0 : i64, tpu.core_type = #tpu.core_type<tc>, window_params = [{transform_indices = @transform_0, window_bounds = array<i64: 1, 16, 16, 8>}, {pipeline_mode = #tpu.pipeline_mode<synchronous>, transform_indices = @transform_1, window_bounds = array<i64: 72, 8>}, {pipeline_mode = #tpu.pipeline_mode<synchronous>, transform_indices = @transform_2, window_bounds = array<i64: 1, 8>}, {pipeline_mode = #tpu.pipeline_mode<synchronous>, transform_indices = @transform_3, window_bounds = array<i64: 8, 72>}, {pipeline_mode = #tpu.pipeline_mode<synchronous>, transform_indices = @transform_4, window_bounds = array<i64: 8, 1>}, {transform_indices = @transform_5, window_bounds = array<i64: 1, 8, 64>}]} {
    %c0 = arith.constant 0 : index
    %c0_0 = arith.constant 0 : index
    %c0_1 = arith.constant 0 : index
    %c0_2 = arith.constant 0 : index
    %0 = vector.load %arg1[%c0, %c0_0, %c0_1, %c0_2] : memref<1x16x16x8xf32, #tpu.memory_space<vmem>>, vector<1x16x16x8xf32>
    %1 = vector.shape_cast %0 : vector<1x16x16x8xf32> to vector<16x16x8xf32>
    %2 = vector.shape_cast %1 : vector<16x16x8xf32> to vector<16x8x2x8xf32>
    %3 = vector.extract_strided_slice %2 {offsets = [0, 0, 0, 0], sizes = [16, 8, 1, 8], strides = [1, 1, 1, 1]} : vector<16x8x2x8xf32> to vector<16x8x1x8xf32>
    %4 = vector.shape_cast %3 : vector<16x8x1x8xf32> to vector<16x8x8xf32>
    %5 = vector.extract_strided_slice %2 {offsets = [0, 0, 1, 0], sizes = [16, 8, 1, 8], strides = [1, 1, 1, 1]} : vector<16x8x2x8xf32> to vector<16x8x1x8xf32>
    %6 = vector.shape_cast %5 : vector<16x8x1x8xf32> to vector<16x8x8xf32>
    %7 = arith.maximumf %4, %6 : vector<16x8x8xf32>
    %8 = vector.shape_cast %7 : vector<16x8x8xf32> to vector<8x2x8x8xf32>
    %9 = vector.extract_strided_slice %8 {offsets = [0, 0, 0, 0], sizes = [8, 1, 8, 8], strides = [1, 1, 1, 1]} : vector<8x2x8x8xf32> to vector<8x1x8x8xf32>
    %10 = vector.shape_cast %9 : vector<8x1x8x8xf32> to vector<8x8x8xf32>
    %11 = vector.extract_strided_slice %8 {offsets = [0, 1, 0, 0], sizes = [8, 1, 8, 8], strides = [1, 1, 1, 1]} : vector<8x2x8x8xf32> to vector<8x1x8x8xf32>
    %12 = vector.shape_cast %11 : vector<8x1x8x8xf32> to vector<8x8x8xf32>
    %13 = arith.maximumf %10, %12 : vector<8x8x8xf32>
    %cst = arith.constant 0.000000e+00 : f32
    %14 = vector.broadcast %cst : f32 to vector<1x8x8xf32>
    %15 = tpu.concatenate %14, %13, %14 in 0 : vector<1x8x8xf32>, vector<8x8x8xf32>, vector<1x8x8xf32> -> vector<10x8x8xf32>
    %cst_3 = arith.constant 0.000000e+00 : f32
    %16 = vector.broadcast %cst_3 : f32 to vector<10x1x8xf32>
    %17 = tpu.concatenate %16, %15, %16 in 1 : vector<10x1x8xf32>, vector<10x8x8xf32>, vector<10x1x8xf32> -> vector<10x10x8xf32>
    %18 = vector.extract_strided_slice %17 {offsets = [0, 0, 0], sizes = [8, 8, 8], strides = [1, 1, 1]} : vector<10x10x8xf32> to vector<8x8x8xf32>
    %19 = vector.extract_strided_slice %17 {offsets = [0, 1, 0], sizes = [8, 8, 8], strides = [1, 1, 1]} : vector<10x10x8xf32> to vector<8x8x8xf32>
    %20 = vector.extract_strided_slice %17 {offsets = [0, 2, 0], sizes = [8, 8, 8], strides = [1, 1, 1]} : vector<10x10x8xf32> to vector<8x8x8xf32>
    %21 = vector.extract_strided_slice %17 {offsets = [1, 0, 0], sizes = [8, 8, 8], strides = [1, 1, 1]} : vector<10x10x8xf32> to vector<8x8x8xf32>
    %22 = vector.extract_strided_slice %17 {offsets = [1, 1, 0], sizes = [8, 8, 8], strides = [1, 1, 1]} : vector<10x10x8xf32> to vector<8x8x8xf32>
    %23 = vector.extract_strided_slice %17 {offsets = [1, 2, 0], sizes = [8, 8, 8], strides = [1, 1, 1]} : vector<10x10x8xf32> to vector<8x8x8xf32>
    %24 = vector.extract_strided_slice %17 {offsets = [2, 0, 0], sizes = [8, 8, 8], strides = [1, 1, 1]} : vector<10x10x8xf32> to vector<8x8x8xf32>
    %25 = vector.extract_strided_slice %17 {offsets = [2, 1, 0], sizes = [8, 8, 8], strides = [1, 1, 1]} : vector<10x10x8xf32> to vector<8x8x8xf32>
    %26 = vector.extract_strided_slice %17 {offsets = [2, 2, 0], sizes = [8, 8, 8], strides = [1, 1, 1]} : vector<10x10x8xf32> to vector<8x8x8xf32>
    %27 = tpu.concatenate %18, %19, %20, %21, %22, %23, %24, %25, %26 in 2 : vector<8x8x8xf32>, vector<8x8x8xf32>, vector<8x8x8xf32>, vector<8x8x8xf32>, vector<8x8x8xf32>, vector<8x8x8xf32>, vector<8x8x8xf32>, vector<8x8x8xf32>, vector<8x8x8xf32> -> vector<8x8x72xf32>
    %28 = vector.shape_cast %27 : vector<8x8x72xf32> to vector<64x72xf32>
    %c0_4 = arith.constant 0 : index
    %c0_5 = arith.constant 0 : index
    %29 = vector.load %arg2[%c0_4, %c0_5] : memref<72x8xf32, #tpu.memory_space<vmem>>, vector<72x8xf32>
    %cst_6 = arith.constant dense<0.000000e+00> : vector<64x8xf32>
    %30 = tpu.matmul %28, %29, %cst_6 {dimension_numbers = #tpu.dot_dimension_numbers<[1], [0], [0], [1], [0, 0, 1, 1], [], []>} : vector<64x72xf32>, vector<72x8xf32>, vector<64x8xf32> -> vector<64x8xf32>
    %c0_7 = arith.constant 0 : index
    %c0_8 = arith.constant 0 : index
    %31 = vector.load %arg3[%c0_7, %c0_8] : memref<1x8xf32, #tpu.memory_space<vmem>>, vector<1x8xf32>
    %32 = vector.broadcast %31 : vector<1x8xf32> to vector<64x8xf32>
    %33 = arith.addf %30, %32 : vector<64x8xf32>
    %cst_9 = arith.constant 0.000000e+00 : f32
    %34 = vector.broadcast %cst_9 : f32 to vector<64x8xf32>
    %35 = arith.maximumf %33, %34 : vector<64x8xf32>
    %36 = vector.shape_cast %35 : vector<64x8xf32> to vector<8x8x8xf32>
    %cst_10 = arith.constant 0.000000e+00 : f32
    %37 = vector.broadcast %cst_10 : f32 to vector<1x8x8xf32>
    %38 = tpu.concatenate %37, %36, %37 in 0 : vector<1x8x8xf32>, vector<8x8x8xf32>, vector<1x8x8xf32> -> vector<10x8x8xf32>
    %cst_11 = arith.constant 0.000000e+00 : f32
    %39 = vector.broadcast %cst_11 : f32 to vector<10x1x8xf32>
    %40 = tpu.concatenate %39, %38, %39 in 1 : vector<10x1x8xf32>, vector<10x8x8xf32>, vector<10x1x8xf32> -> vector<10x10x8xf32>
    %41 = vector.extract_strided_slice %40 {offsets = [0, 0, 0], sizes = [8, 8, 8], strides = [1, 1, 1]} : vector<10x10x8xf32> to vector<8x8x8xf32>
    %42 = vector.extract_strided_slice %40 {offsets = [0, 1, 0], sizes = [8, 8, 8], strides = [1, 1, 1]} : vector<10x10x8xf32> to vector<8x8x8xf32>
    %43 = vector.extract_strided_slice %40 {offsets = [0, 2, 0], sizes = [8, 8, 8], strides = [1, 1, 1]} : vector<10x10x8xf32> to vector<8x8x8xf32>
    %44 = vector.extract_strided_slice %40 {offsets = [1, 0, 0], sizes = [8, 8, 8], strides = [1, 1, 1]} : vector<10x10x8xf32> to vector<8x8x8xf32>
    %45 = vector.extract_strided_slice %40 {offsets = [1, 1, 0], sizes = [8, 8, 8], strides = [1, 1, 1]} : vector<10x10x8xf32> to vector<8x8x8xf32>
    %46 = vector.extract_strided_slice %40 {offsets = [1, 2, 0], sizes = [8, 8, 8], strides = [1, 1, 1]} : vector<10x10x8xf32> to vector<8x8x8xf32>
    %47 = vector.extract_strided_slice %40 {offsets = [2, 0, 0], sizes = [8, 8, 8], strides = [1, 1, 1]} : vector<10x10x8xf32> to vector<8x8x8xf32>
    %48 = vector.extract_strided_slice %40 {offsets = [2, 1, 0], sizes = [8, 8, 8], strides = [1, 1, 1]} : vector<10x10x8xf32> to vector<8x8x8xf32>
    %49 = vector.extract_strided_slice %40 {offsets = [2, 2, 0], sizes = [8, 8, 8], strides = [1, 1, 1]} : vector<10x10x8xf32> to vector<8x8x8xf32>
    %50 = tpu.concatenate %41, %42, %43, %44, %45, %46, %47, %48, %49 in 2 : vector<8x8x8xf32>, vector<8x8x8xf32>, vector<8x8x8xf32>, vector<8x8x8xf32>, vector<8x8x8xf32>, vector<8x8x8xf32>, vector<8x8x8xf32>, vector<8x8x8xf32>, vector<8x8x8xf32> -> vector<8x8x72xf32>
    %51 = vector.shape_cast %50 : vector<8x8x72xf32> to vector<64x72xf32>
    %c0_12 = arith.constant 0 : index
    %c0_13 = arith.constant 0 : index
    %52 = vector.load %arg4[%c0_12, %c0_13] : memref<8x72xf32, #tpu.memory_space<vmem>>, vector<8x72xf32>
    %cst_14 = arith.constant dense<0.000000e+00> : vector<8x64xf32>
    %53 = tpu.matmul %52, %51, %cst_14 {dimension_numbers = #tpu.dot_dimension_numbers<[1], [1], [0], [0], [0, 0, 1, 0], [], []>} : vector<8x72xf32>, vector<64x72xf32>, vector<8x64xf32> -> vector<8x64xf32>
    %c0_15 = arith.constant 0 : index
    %c0_16 = arith.constant 0 : index
    %54 = vector.load %arg5[%c0_15, %c0_16] : memref<8x1xf32, #tpu.memory_space<vmem>>, vector<8x1xf32>
    %55 = vector.broadcast %54 : vector<8x1xf32> to vector<8x64xf32>
    %56 = arith.addf %53, %55 : vector<8x64xf32>
    %cst_17 = arith.constant 0.000000e+00 : f32
    %57 = vector.broadcast %cst_17 : f32 to vector<8x64xf32>
    %58 = arith.maximumf %56, %57 : vector<8x64xf32>
    %c0_18 = arith.constant 0 : index
    %c0_19 = arith.constant 0 : index
    %c0_20 = arith.constant 0 : index
    %59 = vector.load %arg6[%c0_18, %c0_19, %c0_20] : memref<1x8x64xf32, #tpu.memory_space<vmem>>, vector<1x8x64xf32>
    %60 = vector.shape_cast %59 : vector<1x8x64xf32> to vector<8x64xf32>
    %61 = vector.shape_cast %58 : vector<8x64xf32> to vector<1x8x64xf32>
    tpu.vector_store %arg6[%c0_18, %c0_19, %c0_20], %61 {strides = array<i32>} : memref<1x8x64xf32, #tpu.memory_space<vmem>>, vector<1x8x64xf32>,
    return
  }
  func.func @transform_0(%arg0: i32) -> (i32, i32, i32, i32) {
    %c0_i32 = arith.constant 0 : i32
    %c0_i32_0 = arith.constant 0 : i32
    %c0_i32_1 = arith.constant 0 : i32
    %c0_i32_2 = arith.constant 0 : i32
    return %arg0, %c0_i32, %c0_i32_0, %c0_i32_1 : i32, i32, i32, i32
  }
  func.func @transform_1(%arg0: i32) -> (i32, i32) {
    %c0_i32 = arith.constant 0 : i32
    %c0_i32_0 = arith.constant 0 : i32
    %c0_i32_1 = arith.constant 0 : i32
    return %c0_i32, %c0_i32_0 : i32, i32
  }
  func.func @transform_2(%arg0: i32) -> (i32, i32) {
    %c0_i32 = arith.constant 0 : i32
    %c0_i32_0 = arith.constant 0 : i32
    %c0_i32_1 = arith.constant 0 : i32
    return %c0_i32, %c0_i32_0 : i32, i32
  }
  func.func @transform_3(%arg0: i32) -> (i32, i32) {
    %c0_i32 = arith.constant 0 : i32
    %c0_i32_0 = arith.constant 0 : i32
    %c0_i32_1 = arith.constant 0 : i32
    return %c0_i32, %c0_i32_0 : i32, i32
  }
  func.func @transform_4(%arg0: i32) -> (i32, i32) {
    %c0_i32 = arith.constant 0 : i32
    %c0_i32_0 = arith.constant 0 : i32
    %c0_i32_1 = arith.constant 0 : i32
    return %c0_i32, %c0_i32_0 : i32, i32
  }
  func.func @transform_5(%arg0: i32) -> (i32, i32, i32) {
    %c0_i32 = arith.constant 0 : i32
    %c0_i32_0 = arith.constant 0 : i32
    %c0_i32_1 = arith.constant 0 : i32
    return %arg0, %c0_i32, %c0_i32_0 : i32, i32, i32
  }
}

</mosaic_0001>

<bundles_post_ra>
// kernel: tpu_custom_call.1
= control target key start
LH: loop header
LB: loop body
LE: loop exit
PB: predicated region body
PF: predicated region fallthrough
CT: control target
= control target key end

     0   :  { %10 = vsyncpa [#allocation3], 0  ;;  %s4381_s0 = inlined_call_operand.vmem [shape: f32[2,16,16,8], index: 0, kind: input, shape index: {}]   ;;  %s4382_s1 = inlined_call_operand.vmem [shape: f32[72,8], index: 1, kind: input, shape index: {}]   ;;  %s4383_s2 = inlined_call_operand.vmem [shape: f32[1,8], index: 2, kind: input, shape index: {}]   ;;  %s4384_s3 = inlined_call_operand.vmem [shape: f32[8,72], index: 3, kind: input, shape index: {}]   ;;  %s4385_s4 = inlined_call_operand.vmem [shape: f32[8,1], index: 4, kind: input, shape index: {}]   ;;  %s4386_s5 = inlined_call_operand.hbm [shape: f32[2,8,64], index: 5, kind: output, shape index: {}]  }
   0x1   :  { %12 = vsyncpa [#allocation3 + $0x1], 0  ;;  %s3393_s18 = smov 0   ;;  %s3395_s19 = smov 0  }
   0x2   :  { %s3397_s20 = smov 0   ;;  %s3399_s21 = smov 0  }
   0x3 LB: > { %s3414_s22 = sadd.s32 4294967295, %s3348_s21   ;;  %s2970_s23 = sadd.s32 4294967294, %s3348_s21   ;;  %s3348_s21 = sphi %s3399_s21, %s4392_s21   ;;  %s3344_s20 = sphi %s3397_s20, %s4391_s20   ;;  %s3340_s19 = sphi %s3395_s19, %s4390_s19   ;;  %s3336_s18 = sphi %s3393_s18, %s4389_s18  }
   0x4   : > { %s3418_s24 = sadd.s32 1, %s3348_s21   ;;  %s135_s25 = sadd.s32 1, %s3344_s20 }
   0x5   : > { %s132_s26 = ssub.s32 %s3348_s21, %s3418_s24  ;;  %p145_p0 = scmp.ne.s32.totalorder %s3344_s20, %s3340_s19 }
   0x6   : > { %p133_p1 = scmp.eq.s32.totalorder %s132_s26, 0  ;;  %p146_p2 = scmp.eq.s32.totalorder %s3414_s22, 1 }
   0x7   : > { %p151_p3 = scmp.ne.s32.totalorder %s3340_s19, %s3336_s18  ;;  %p152_p4 = scmp.eq.s32.totalorder %s2970_s23, 1 }
   0x8   : > { %s3429_s27 = scalar_select %p133_p1, %s3344_s20, %s135_s25  }
   0x9   : > { %p3431_p5 = por %p146_p2, %p145_p0  ;;  %p3435_p6 = por %p152_p4, %p151_p3 }
   0xa   : > { %p2973_p7 = scmp.ge.s32.totalorder %s3348_s21, 1  ;;  %p190_p8 = scmp.lt.s32.totalorder %s3348_s21, 3 }
   0xc   : > { %p191_p9 = pnand %p2973_p7, %p190_p8 }
   0xd   : > { %p218_p10 = scmp.lt.s32.totalorder (!%p191_p9), %s3414_s22, 1  ;;  %s3352_s10 = smov (!%p191_p9), 16  }
   0xe   : > { %194 = sbr.rel (%p191_p9) target bundleno = 971 (0x3cb), region = 40  ;;  %s3353_s11 = smov (!%p191_p9), 8  }
   0xf   : > { %s3354_s12 = smov (!%p191_p9), 24   ;;  %s3355_s13 = smov (!%p191_p9), 48  }
  0x10   : > { %s3356_s16 = smov (!%p191_p9), 32   ;;  %s3357_s25 = smov (!%p191_p9), 40  }
  0x11   : > { %s3358_s15 = smov (!%p191_p9), 56   ;;  %s3359_s8 = smov (!%p191_p9), 64  }
  0x13   : > { %vm1937_vm0 = vcmask 1040384   ;;  %v3350_v0 = vmov 0.0   ;;  %v291_v2 = vlaneseq  ;;  %vm2021_vm1 = vcmask 1045504   ;;  %s219_s30 = scalar_select %p218_p10, %s3414_s22, 1 }
  0x14   : > { %v1919_v1 = vrot.slane %v3350_v0, 7  ;;  %3184 = vmatprep.subr.mxu1 %v3350_v0  ;;  %v3351_v3 = vmov 1983009808   ;;  %vm1972_vm2 = vcmask 1046528   ;;  %vm1855_vm3 = vcmask 1041409  }
  0x15   : > { %v289_v4 = vunpack.c.l.s4 %v3351_v3  ;;  %v292_v7 = vshrl.u32 %v291_v2, 7  ;;  %s3127_s6 = sshll.u32 %s219_s30, 8  ;;  %vm1857_vm4 = vcmask 1042434   ;;  %vm1859_vm5 = vcmask 1043459  }
  0x16   : > { %v3445_v5 = vsel %vm1937_vm0, 0.0, %v1919_v1  ;;  %v1947_v6 = vsel %vm1937_vm0, %v1919_v1, 0.0  ;;  %s3460_s9 = scalar_lea.vmem %s4381_s0, %s3127_s6  ;;  %vm1861_vm6 = vcmask 1044484   ;;  %vm1863_vm7 = vcmask 1045509  }
  0x17   : > { %v2022_v8 = vrot.slane %v3445_v5, 2  ;;  %v2023_v9 = vrot.slane %v1947_v6, 2  ;;  %v1973_v10 = vrot.slane %v3445_v5, 1  ;;  %v1974_v11 = vrot.slane %v1947_v6, 1  ;;  %v227_v15 = vld [vmem:[%s3460_s9 + $0x20] sm:$0xff]  ;;  %v228_v16 = vld [vmem:[%s3460_s9 + $0x28] sm:$0xff] }
  0x18   : > { %v290_v12 = vunpack.c.0.s8 %v289_v4  ;;  %v229_v18 = vld [vmem:[%s3460_s9 + $0x30] sm:$0xff]  ;;  %v230_v19 = vld [vmem:[%s3460_s9 + $0x38] sm:$0xff]  ;;  %v355_v20 = vcombine.high %v227_v15, %v227_v15  ;;  %v372_v21 = vcombine.high %v228_v16, %v228_v16  ;;  %v3472_v22 = vsub.s32 0, %v292_v7 }
  0x19   : > { %v3452_v13 = vsel %vm2021_vm1, %v2022_v8, %v2023_v9  ;;  %v3455_v14 = vsel %vm1972_vm2, %v1973_v10, %v1974_v11  ;;  %v389_v25 = vcombine.high %v229_v18, %v229_v18  ;;  %v406_v29 = vcombine.high %v230_v19, %v230_v19 }
  0x1a   : > { %2046 = vrot.lane.b32.xlu1 %v3452_v13, %s3352_s10  ;;  %1997 = vrot.lane.b32.xlu0 %v3455_v14, %s3353_s11  ;;  %v3468_v17 = vsub.s32 %v290_v12, %v292_v7  ;;  %vm1865_vm8 = vcmask 1046534   ;;  %vm1867_vm9 = vcmask 1047559   ;;  %vm2222_vm10 = vcmask 64512  }
  0x1b   : > { %vm2231_vm11 = vcmask 130048   ;;  %vm2240_vm12 = vcmask 195584   ;;  %vm2249_vm13 = vcmask 261120   ;;  %vm2258_vm14 = vcmask 326656  }
  0x1c   : > { %v362_v23 = vrot.slane %v227_v15, %v3468_v17  ;;  %v379_v24 = vrot.slane %v228_v16, %v3468_v17  ;;  %v396_v26 = vrot.slane %v229_v18, %v3468_v17  ;;  %v369_v27 = vrot.slane %v355_v20, %v3468_v17  ;;  %v223_v20 = vld [vmem:[%s3460_s9] sm:$0xff] }
  0x1d   : > { %v386_v28 = vrot.slane %v372_v21, %v3468_v17  ;;  %v413_v30 = vrot.slane %v230_v19, %v3468_v17  ;;  %v403_v33 = vrot.slane %v389_v25, %v3468_v17  ;;  %v420_v37 = vrot.slane %v406_v29, %v3468_v17 }
  0x1e   : > { %v370_v31 = vcombine.high %v362_v23, %v362_v23  ;;  %v387_v32 = vcombine.high %v379_v24, %v379_v24  ;;  %v404_v34 = vcombine.high %v396_v26, %v396_v26  ;;  %v371_v35 = vcombine.high %v369_v27, %v369_v27 }
  0x1f   : > { %v388_v36 = vcombine.high %v386_v28, %v386_v28  ;;  %v421_v38 = vcombine.high %v413_v30, %v413_v30  ;;  %v405_v39 = vcombine.high %v403_v33, %v403_v33  ;;  %v2993_v40 = vrot.slane %v362_v23, 9 }
  0x20   : > { %v2994_v41 = vrot.slane %v370_v31, 9  ;;  %v2995_v42 = vrot.slane %v369_v27, 9  ;;  %v422_v43 = vcombine.high %v420_v37, %v420_v37  ;;  %v2996_v44 = vrot.slane %v371_v35, 9 }
  0x21   : > { %v2997_v45 = vrot.slane %v379_v24, 9  ;;  %v2998_v46 = vrot.slane %v387_v32, 9  ;;  %v2999_v47 = vrot.slane %v386_v28, 9  ;;  %v3000_v48 = vrot.slane %v388_v36, 9 }
  0x22   : > { %v3001_v49 = vrot.slane %v396_v26, 9  ;;  %v3002_v50 = vrot.slane %v404_v34, 9  ;;  %v3003_v51 = vrot.slane %v403_v33, 9  ;;  %v3004_v52 = vrot.slane %v405_v39, 9 }
  0x23   : > { %v3005_v53 = vrot.slane %v413_v30, 9  ;;  %v3006_v54 = vrot.slane %v421_v38, 9  ;;  %v3007_v55 = vrot.slane %v420_v37, 9  ;;  %v3008_v56 = vrot.slane %v422_v43, 9 }
  0x24   : > { %v1359_v57 = vmax.f32 %v362_v23, %v2993_v40  ;;  %v1360_v58 = vmax.f32 %v370_v31, %v2994_v41  ;;  %v1361_v59 = vmax.f32 %v369_v27, %v2995_v42  ;;  %v1362_v60 = vmax.f32 %v371_v35, %v2996_v44  ;;  %v225_v31 = vld [vmem:[%s3460_s9 + $0x10] sm:$0xff]  ;;  %v226_v41 = vld [vmem:[%s3460_s9 + $0x18] sm:$0xff] }
  0x25   : > { %v1363_v61 = vmax.f32 %v379_v24, %v2997_v45  ;;  %v1364_v62 = vmax.f32 %v387_v32, %v2998_v46  ;;  %v1365_v63 = vmax.f32 %v386_v28, %v2999_v47  ;;  %v1366_v1 = vmax.f32 %v388_v36, %v3000_v48 }
  0x26   : > { %v1367_v2 = vmax.f32 %v396_v26, %v3001_v49  ;;  %v1368_v3 = vmax.f32 %v404_v34, %v3002_v50  ;;  %v1369_v4 = vmax.f32 %v403_v33, %v3003_v51  ;;  %v1370_v6 = vmax.f32 %v405_v39, %v3004_v52  ;;  %v224_v26 = vld [vmem:[%s3460_s9 + $0x8] sm:$0xff] }
  0x27   : > { %v1371_v7 = vmax.f32 %v413_v30, %v3005_v53  ;;  %v1372_v8 = vmax.f32 %v421_v38, %v3006_v54  ;;  %v1373_v9 = vmax.f32 %v420_v37, %v3007_v55  ;;  %v1374_v10 = vmax.f32 %v422_v43, %v3008_v56 }
  0x28   : > { %v1479_v11 = vmax.f32 %v1359_v57, %v1367_v2  ;;  %v1480_v12 = vmax.f32 %v1360_v58, %v1368_v3  ;;  %v1481_v15 = vmax.f32 %v1361_v59, %v1369_v4  ;;  %v1482_v16 = vmax.f32 %v1362_v60, %v1370_v6 }
  0x29   : > { %v1483_v18 = vmax.f32 %v1363_v61, %v1371_v7  ;;  %v1484_v19 = vmax.f32 %v1364_v62, %v1372_v8  ;;  %v1485_v21 = vmax.f32 %v1365_v63, %v1373_v9  ;;  %v1486_v23 = vmax.f32 %v1366_v1, %v1374_v10 }
  0x2a   : > { %v1634_v24 = vrot.slane %v1479_v11, %v3472_v22  ;;  %v1638_v25 = vrot.slane %v1480_v12, %v3472_v22  ;;  %v1642_v27 = vrot.slane %v1481_v15, %v3472_v22  ;;  %v1646_v28 = vrot.slane %v1482_v16, %v3472_v22 }
  0x2b   : > { %v1650_v29 = vrot.slane %v1483_v18, %v3472_v22  ;;  %v1654_v30 = vrot.slane %v1484_v19, %v3472_v22  ;;  %v1658_v32 = vrot.slane %v1485_v21, %v3472_v22  ;;  %v1662_v33 = vrot.slane %v1486_v23, %v3472_v22 }
  0x2c   : > { %v1869_v34 = vsel %vm1855_vm3, %v1638_v25, %v1634_v24  ;;  %v287_v35 = vcombine.high %v223_v20, %v223_v20  ;;  %v294_v37 = vrot.slane %v223_v20, %v3468_v17  ;;  %v304_v38 = vcombine.high %v224_v26, %v224_v26 }
  0x2d   : > { %v1870_v36 = vsel %vm1857_vm4, %v1642_v27, %v1869_v34  ;;  %v311_v39 = vrot.slane %v224_v26, %v3468_v17  ;;  %v321_v43 = vcombine.high %v225_v31, %v225_v31  ;;  %v328_v44 = vrot.slane %v225_v31, %v3468_v17 }
  0x2e   : > { %v1871_v40 = vsel %vm1859_vm5, %v1646_v28, %v1870_v36  ;;  %v301_v42 = vrot.slane %v287_v35, %v3468_v17  ;;  %v302_v46 = vcombine.high %v294_v37, %v294_v37  ;;  %v318_v47 = vrot.slane %v304_v38, %v3468_v17 }
  0x2f   : > { %v1872_v45 = vsel %vm1861_vm6, %v1650_v29, %v1871_v40  ;;  %v319_v48 = vcombine.high %v311_v39, %v311_v39  ;;  %v335_v51 = vrot.slane %v321_v43, %v3468_v17  ;;  %v336_v52 = vcombine.high %v328_v44, %v328_v44  ;;  %v231_v43 = vld [vmem:[%s3460_s9 + $0x40] sm:$0xff] }
  0x30   : > { %v1873_v49 = vsel %vm1863_vm7, %v1654_v30, %v1872_v45  ;;  %v303_v50 = vcombine.high %v301_v42, %v301_v42  ;;  %v320_v54 = vcombine.high %v318_v47, %v318_v47  ;;  %v338_v55 = vcombine.high %v226_v41, %v226_v41 }
  0x31   : > { %v1874_v53 = vsel %vm1865_vm8, %v1658_v32, %v1873_v49  ;;  %v345_v56 = vrot.slane %v226_v41, %v3468_v17  ;;  %v337_v58 = vcombine.high %v335_v51, %v335_v51  ;;  %v2977_v59 = vrot.slane %v294_v37, 9 }
  0x32   : > { %v3508_v57 = vsel %vm1867_vm9, %v1662_v33, %v1874_v53  ;;  %v2978_v60 = vrot.slane %v302_v46, 9  ;;  %v352_v62 = vrot.slane %v338_v55, %v3468_v17  ;;  %v2979_v1 = vrot.slane %v301_v42, 9  ;;  %v233_v53 = vld [vmem:[%s3460_s9 + $0x50] sm:$0xff] }
  0x33   : > { %v1921_v61 = vrot.slane %v3508_v57, 7  ;;  %v353_v63 = vcombine.high %v345_v56, %v345_v56  ;;  %v2980_v2 = vrot.slane %v303_v50, 9  ;;  %v2981_v3 = vrot.slane %v311_v39, 9 }
  0x34   : > { %v2982_v4 = vrot.slane %v319_v48, 9  ;;  %v2983_v6 = vrot.slane %v318_v47, 9  ;;  %v354_v8 = vcombine.high %v352_v62, %v352_v62  ;;  %v2984_v9 = vrot.slane %v320_v54, 9 }
  0x35   : > { %v3515_v7 = vsel %vm1937_vm0, 0.0, %v1921_v61  ;;  %v2985_v10 = vrot.slane %v328_v44, 9  ;;  %v2986_v11 = vrot.slane %v336_v52, 9  ;;  %v2987_v12 = vrot.slane %v335_v51, 9 }
  0x36   : > { %2073 = vrot.lane.b32.xlu1 %v3515_v7, %s3354_s12  ;;  %v2988_v15 = vrot.slane %v337_v58, 9  ;;  %v2989_v16 = vrot.slane %v345_v56, 9  ;;  %v2990_v18 = vrot.slane %v353_v63, 9  ;;  %v2991_v19 = vrot.slane %v352_v62, 9 }
  0x37   : > { %v2992_v20 = vrot.slane %v354_v8, 9  ;;  %v1343_v21 = vmax.f32 %v294_v37, %v2977_v59  ;;  %v1344_v23 = vmax.f32 %v302_v46, %v2978_v60  ;;  %v1345_v24 = vmax.f32 %v301_v42, %v2979_v1 }
  0x38   : > { %v1346_v25 = vmax.f32 %v303_v50, %v2980_v2  ;;  %v1347_v26 = vmax.f32 %v311_v39, %v2981_v3  ;;  %v1348_v27 = vmax.f32 %v319_v48, %v2982_v4  ;;  %v1349_v28 = vmax.f32 %v318_v47, %v2983_v6  ;;  %v232_v48 = vld [vmem:[%s3460_s9 + $0x48] sm:$0xff]  ;;  %v234_v2 = vld [vmem:[%s3460_s9 + $0x58] sm:$0xff] }
  0x39   : > { %v1350_v29 = vmax.f32 %v320_v54, %v2984_v9  ;;  %v1351_v30 = vmax.f32 %v328_v44, %v2985_v10  ;;  %v1352_v31 = vmax.f32 %v336_v52, %v2986_v11  ;;  %v1353_v32 = vmax.f32 %v335_v51, %v2987_v12 }
  0x3a   : > { %v1354_v33 = vmax.f32 %v337_v58, %v2988_v15  ;;  %v1355_v34 = vmax.f32 %v345_v56, %v2989_v16  ;;  %2150 = vrot.lane.b32.xlu1 %v3515_v7, %s3355_s13  ;;  %v1356_v35 = vmax.f32 %v353_v63, %v2990_v18  ;;  %v1357_v36 = vmax.f32 %v352_v62, %v2991_v19 }
  0x3b   : > { %v1358_v37 = vmax.f32 %v354_v8, %v2992_v20  ;;  %v1471_v38 = vmax.f32 %v1343_v21, %v1351_v30  ;;  %v1472_v39 = vmax.f32 %v1344_v23, %v1352_v31  ;;  %v1473_v40 = vmax.f32 %v1345_v24, %v1353_v32 }
  0x3c   : > { %v1474_v41 = vmax.f32 %v1346_v25, %v1354_v33  ;;  %v1475_v42 = vmax.f32 %v1347_v26, %v1355_v34  ;;  %v1476_v44 = vmax.f32 %v1348_v27, %v1356_v35  ;;  %v1477_v45 = vmax.f32 %v1349_v28, %v1357_v36 }
  0x3d   : > { %v1478_v46 = vmax.f32 %v1350_v29, %v1358_v37  ;;  %v1602_v47 = vrot.slane %v1471_v38, %v3472_v22  ;;  %v1606_v49 = vrot.slane %v1472_v39, %v3472_v22  ;;  %v1610_v50 = vrot.slane %v1473_v40, %v3472_v22 }
  0x3e   : > { %v1614_v51 = vrot.slane %v1474_v41, %v3472_v22  ;;  %v1618_v52 = vrot.slane %v1475_v42, %v3472_v22  ;;  %v1622_v54 = vrot.slane %v1476_v44, %v3472_v22  ;;  %v1626_v55 = vrot.slane %v1477_v45, %v3472_v22 }
  0x3f   : > { %v1630_v56 = vrot.slane %v1478_v46, %v3472_v22  ;;  %v423_v58 = vcombine.high %v231_v43, %v231_v43  ;;  %v1856_v59 = vsel %vm1855_vm3, %v1606_v49, %v1602_v47  ;;  %v430_v60 = vrot.slane %v231_v43, %v3468_v17 }
  0x40   : > { %v440_v62 = vcombine.high %v232_v48, %v232_v48  ;;  %v447_v63 = vrot.slane %v232_v48, %v3468_v17  ;;  %v1858_v1 = vsel %vm1857_vm4, %v1610_v50, %v1856_v59  ;;  %v457_v4 = vcombine.high %v233_v53, %v233_v53 }
  0x41   : > { %v437_v3 = vrot.slane %v423_v58, %v3468_v17  ;;  %v464_v6 = vrot.slane %v233_v53, %v3468_v17  ;;  %v1860_v8 = vsel %vm1859_vm5, %v1614_v51, %v1858_v1  ;;  %v438_v9 = vcombine.high %v430_v60, %v430_v60 }
  0x42   : > { %v454_v10 = vrot.slane %v440_v62, %v3468_v17  ;;  %v455_v11 = vcombine.high %v447_v63, %v447_v63  ;;  %v1862_v12 = vsel %vm1861_vm6, %v1618_v52, %v1860_v8  ;;  %v471_v16 = vrot.slane %v457_v4, %v3468_v17 }
  0x43   : > { %v439_v15 = vcombine.high %v437_v3, %v437_v3  ;;  %v472_v18 = vcombine.high %v464_v6, %v464_v6  ;;  %v1864_v19 = vsel %vm1863_vm7, %v1622_v54, %v1862_v12  ;;  %v474_v21 = vcombine.high %v234_v2, %v234_v2 }
  0x44   : > { %v456_v20 = vcombine.high %v454_v10, %v454_v10  ;;  %v481_v23 = vrot.slane %v234_v2, %v3468_v17  ;;  %v1866_v24 = vsel %vm1865_vm8, %v1626_v55, %v1864_v19  ;;  %v473_v25 = vcombine.high %v471_v16, %v471_v16 }
  0x45   : > { %v3009_v26 = vrot.slane %v430_v60, 9  ;;  %v3010_v27 = vrot.slane %v438_v9, 9  ;;  %v1868_v28 = vsel %vm1867_vm9, %v1630_v56, %v1866_v24  ;;  %v488_v29 = vrot.slane %v474_v21, %v3468_v17 }
  0x46   : > { %v489_v30 = vcombine.high %v481_v23, %v481_v23  ;;  %v3011_v31 = vrot.slane %v437_v3, 9  ;;  %v1920_v32 = vrot.slane %v1868_v28, 7  ;;  %v3012_v33 = vrot.slane %v439_v15, 9 }
  0x47   : > { %v3013_v34 = vrot.slane %v447_v63, 9  ;;  %v3014_v35 = vrot.slane %v455_v11, 9  ;;  %v490_v36 = vcombine.high %v488_v29, %v488_v29  ;;  %v3015_v37 = vrot.slane %v454_v10, 9 }
  0x48   : > { %v3016_v38 = vrot.slane %v456_v20, 9  ;;  %v3017_v39 = vrot.slane %v464_v6, 9  ;;  %v3549_v40 = vsel %vm1937_vm0, 0.0, %v1920_v32  ;;  %v3018_v41 = vrot.slane %v472_v18, 9 }
  0x49   : > { %v3019_v42 = vrot.slane %v471_v16, 9  ;;  %v3020_v43 = vrot.slane %v473_v25, 9  ;;  %2071 = vrot.lane.b32.xlu0 %v3549_v40, %s3354_s12  ;;  %v3021_v44 = vrot.slane %v481_v23, 9  ;;  %v3022_v45 = vrot.slane %v489_v30, 9 }
  0x4a   : > { %v3023_v46 = vrot.slane %v488_v29, 9  ;;  %v3024_v47 = vrot.slane %v490_v36, 9  ;;  %v1375_v48 = vmax.f32 %v430_v60, %v3009_v26  ;;  %v1376_v49 = vmax.f32 %v438_v9, %v3010_v27 }
  0x4b   : > { %v1377_v50 = vmax.f32 %v437_v3, %v3011_v31  ;;  %v1378_v51 = vmax.f32 %v439_v15, %v3012_v33  ;;  %v1379_v52 = vmax.f32 %v447_v63, %v3013_v34  ;;  %v1380_v53 = vmax.f32 %v455_v11, %v3014_v35  ;;  %v235_v34 = vld [vmem:[%s3460_s9 + $0x60] sm:$0xff] }
  0x4c   : > { %v1381_v54 = vmax.f32 %v454_v10, %v3015_v37  ;;  %v1382_v55 = vmax.f32 %v456_v20, %v3016_v38  ;;  %v1383_v56 = vmax.f32 %v464_v6, %v3017_v39  ;;  %v1384_v58 = vmax.f32 %v472_v18, %v3018_v41  ;;  %v236_v38 = vld [vmem:[%s3460_s9 + $0x68] sm:$0xff] }
  0x4d   : > { %v1385_v59 = vmax.f32 %v471_v16, %v3019_v42  ;;  %v1386_v62 = vmax.f32 %v473_v25, %v3020_v43  ;;  %v1387_v1 = vmax.f32 %v481_v23, %v3021_v44  ;;  %v1388_v2 = vmax.f32 %v489_v30, %v3022_v45 }
  0x4e   : > { %v1389_v4 = vmax.f32 %v488_v29, %v3023_v46  ;;  %v1390_v8 = vmax.f32 %v490_v36, %v3024_v47  ;;  %v1487_v12 = vmax.f32 %v1375_v48, %v1383_v56  ;;  %v1488_v19 = vmax.f32 %v1376_v49, %v1384_v58  ;;  %v238_v49 = vld [vmem:[%s3460_s9 + $0x78] sm:$0xff] }
  0x4f   : > { %v1489_v21 = vmax.f32 %v1377_v50, %v1385_v59  ;;  %v1490_v24 = vmax.f32 %v1378_v51, %v1386_v62  ;;  %v1491_v60 = vmax.f32 %v1379_v52, %v1387_v1  ;;  %v1492_v9 = vmax.f32 %v1380_v53, %v1388_v2 }
  0x50   : > { %v1493_v3 = vmax.f32 %v1381_v54, %v1389_v4  ;;  %v1494_v15 = vmax.f32 %v1382_v55, %v1390_v8  ;;  %v1666_v63 = vrot.slane %v1487_v12, %v3472_v22  ;;  %v1670_v6 = vrot.slane %v1488_v19, %v3472_v22 }
  0x51   : > { %v1674_v10 = vrot.slane %v1489_v21, %v3472_v22  ;;  %v1678_v11 = vrot.slane %v1490_v24, %v3472_v22  ;;  %v1682_v16 = vrot.slane %v1491_v60, %v3472_v22  ;;  %v1686_v18 = vrot.slane %v1492_v9, %v3472_v22 }
  0x52   : > { %v1690_v20 = vrot.slane %v1493_v3, %v3472_v22  ;;  %v1694_v23 = vrot.slane %v1494_v15, %v3472_v22  ;;  %v1876_v25 = vsel %vm1855_vm3, %v1670_v6, %v1666_v63  ;;  %v1948_v26 = vsel %vm1937_vm0, %v1920_v32, 0.0 }
  0x53   : > { %v1976_v27 = vrot.slane %v3549_v40, 1  ;;  %v2025_v28 = vrot.slane %v3549_v40, 2  ;;  %v1877_v29 = vsel %vm1857_vm4, %v1674_v10, %v1876_v25  ;;  %v1977_v30 = vrot.slane %v1948_v26, 1 }
  0x54   : > { %v2026_v31 = vrot.slane %v1948_v26, 2  ;;  %v1949_v33 = vsel %vm1937_vm0, %v1921_v61, 0.0  ;;  %v1878_v35 = vsel %vm1859_vm5, %v1678_v11, %v1877_v29  ;;  %v1979_v36 = vrot.slane %v3515_v7, 1  ;;  %v237_v61 = vld [vmem:[%s3460_s9 + $0x70] sm:$0xff] }
  0x55   : > { %v1980_v32 = vrot.slane %v1949_v33, 1  ;;  %v2028_v37 = vrot.slane %v3515_v7, 2  ;;  %v1879_v39 = vsel %vm1861_vm6, %v1682_v16, %v1878_v35  ;;  %v3576_v41 = vsel %vm1972_vm2, %v1976_v27, %v1977_v30 }
  0x56   : > { %v3579_v42 = vsel %vm2021_vm1, %v2025_v28, %v2026_v31  ;;  %v2029_v57 = vrot.slane %v1949_v33, 2  ;;  %v1880_v43 = vsel %vm1863_vm7, %v1686_v18, %v1879_v39  ;;  %v491_v45 = vcombine.high %v235_v34, %v235_v34 }
  0x57   : > { %v3584_v44 = vsel %vm1972_vm2, %v1979_v36, %v1980_v32  ;;  %v498_v46 = vrot.slane %v235_v34, %v3468_v17  ;;  %v1881_v47 = vsel %vm1865_vm8, %v1690_v20, %v1880_v43  ;;  %v508_v50 = vcombine.high %v236_v38, %v236_v38 }
  0x58   : > { %v3589_v48 = vsel %vm2021_vm1, %v2028_v37, %v2029_v57  ;;  %v515_v51 = vrot.slane %v236_v38, %v3468_v17  ;;  %v1882_v52 = vsel %vm1867_vm9, %v1694_v23, %v1881_v47  ;;  %v505_v53 = vrot.slane %v491_v45, %v3468_v17 }
  0x59   : > { %v506_v54 = vcombine.high %v498_v46, %v498_v46  ;;  %v525_v55 = vcombine.high %v237_v61, %v237_v61  ;;  %v1922_v56 = vrot.slane %v1882_v52, 7  ;;  %v522_v58 = vrot.slane %v508_v50, %v3468_v17 }
  0x5a   : > { %v523_v59 = vcombine.high %v515_v51, %v515_v51  ;;  %v532_v62 = vrot.slane %v237_v61, %v3468_v17  ;;  %v507_v1 = vcombine.high %v505_v53, %v505_v53  ;;  %v542_v4 = vcombine.high %v238_v49, %v238_v49 }
  0x5b   : > { %v539_v2 = vrot.slane %v525_v55, %v3468_v17  ;;  %v549_v8 = vrot.slane %v238_v49, %v3468_v17  ;;  %v3600_v12 = vsel %vm1937_vm0, 0.0, %v1922_v56  ;;  %v1950_v19 = vsel %vm1937_vm0, %v1922_v56, 0.0  ;;  %v2302_v49 = vld [vmem:[%s4382_s1 + $0x40] sm:$0xff] }
  0x5c   : > { %v524_v21 = vcombine.high %v522_v58, %v522_v58  ;;  %v540_v24 = vcombine.high %v532_v62, %v532_v62  ;;  %2152 = vrot.lane.b32.xlu0 %v3600_v12, %s3355_s13  ;;  %2075 = vrot.lane.b32.xlu1 %v3600_v12, %s3354_s12  ;;  %v1982_v60 = vrot.slane %v3600_v12, 1  ;;  %v1983_v9 = vrot.slane %v1950_v19, 1 }
  0x5d   : > { %v2031_v3 = vrot.slane %v3600_v12, 2  ;;  %v2032_v15 = vrot.slane %v1950_v19, 2  ;;  %v541_v63 = vcombine.high %v539_v2, %v539_v2  ;;  %v556_v6 = vrot.slane %v542_v4, %v3468_v17  ;;  %3154 = vmatprep.subr.mxu0 %v2302_v49 }
  0x5e   : > { %v557_v10 = vcombine.high %v549_v8, %v549_v8  ;;  %v3025_v11 = vrot.slane %v498_v46, 9  ;;  %v3611_v16 = vsel %vm1972_vm2, %v1982_v60, %v1983_v9  ;;  %v3026_v20 = vrot.slane %v506_v54, 9  ;;  %3155 = vmatpush3.msra.mxu0 %v2302_v49 }
  0x5f   : > { %v3614_v18 = vsel %vm2021_vm1, %v2031_v3, %v2032_v15  ;;  %v3027_v23 = vrot.slane %v505_v53, 9  ;;  %v558_v25 = vcombine.high %v556_v6, %v556_v6  ;;  %v3028_v26 = vrot.slane %v507_v1, 9  ;;  %v2300_v3 = vld [vmem:[%s4382_s1 + $0x30] sm:$0xff] }
  0x60   : > { %v3029_v27 = vrot.slane %v515_v51, 9  ;;  %v3030_v28 = vrot.slane %v523_v59, 9  ;;  %1999 = vrot.lane.b32.xlu0 %v3576_v41, %s3353_s11  ;;  %2048 = vrot.lane.b32.xlu1 %v3579_v42, %s3352_s10  ;;  %v3031_v29 = vrot.slane %v522_v58, 9  ;;  %v3032_v30 = vrot.slane %v524_v21, 9 }
  0x61   : > { %v3033_v31 = vrot.slane %v532_v62, 9  ;;  %v3034_v33 = vrot.slane %v540_v24, 9  ;;  %v3035_v34 = vrot.slane %v539_v2, 9  ;;  %v3036_v35 = vrot.slane %v541_v63, 9 }
  0x62   : > { %v3037_v36 = vrot.slane %v549_v8, 9  ;;  %v3038_v32 = vrot.slane %v557_v10, 9  ;;  %v3039_v37 = vrot.slane %v556_v6, 9  ;;  %v3040_v38 = vrot.slane %v558_v25, 9 }
  0x63   : > { %v1391_v39 = vmax.f32 %v498_v46, %v3025_v11  ;;  %v1392_v57 = vmax.f32 %v506_v54, %v3026_v20  ;;  %v1393_v61 = vmax.f32 %v505_v53, %v3027_v23  ;;  %v1394_v43 = vmax.f32 %v507_v1, %v3028_v26  ;;  %v241_v11 = vld [vmem:[%s3460_s9 + $0x90] sm:$0xff] }
  0x64   : > { %v1395_v45 = vmax.f32 %v515_v51, %v3029_v27  ;;  %v1396_v47 = vmax.f32 %v523_v59, %v3030_v28  ;;  %2099 = vrot.lane.b32.xlu0 %v3576_v41, %s3356_s16  ;;  %2001 = vrot.lane.b32.xlu1 %v3584_v44, %s3353_s11  ;;  %v1397_v50 = vmax.f32 %v522_v58, %v3031_v29  ;;  %v239_v58 = vld [vmem:[%s3460_s9 + $0x80] sm:$0xff]  ;;  %vm2267_vm15 = vcmask 392192  }
  0x65   : > { %v1398_v52 = vmax.f32 %v524_v21, %v3032_v30  ;;  %v1399_v46 = vmax.f32 %v532_v62, %v3033_v31  ;;  %v1400_v54 = vmax.f32 %v540_v24, %v3034_v33  ;;  %v1401_v53 = vmax.f32 %v539_v2, %v3035_v34  ;;  %v2301_v62 = vld [vmem:[%s4382_s1 + $0x38] sm:$0xff]  ;;  %v240_v24 = vld [vmem:[%s3460_s9 + $0x88] sm:$0xff] }
  0x66   : > { %v1402_v55 = vmax.f32 %v541_v63, %v3036_v35  ;;  %v1403_v51 = vmax.f32 %v549_v8, %v3037_v36  ;;  %v1404_v56 = vmax.f32 %v557_v10, %v3038_v32  ;;  %v1405_v59 = vmax.f32 %v556_v6, %v3039_v37  ;;  %3156 = vmatprep.subr.mxu0 %v2301_v62  ;;  %v2299_v30 = vld [vmem:[%s4382_s1 + $0x28] sm:$0xff]  ;;  %v242_v33 = vld [vmem:[%s3460_s9 + $0x98] sm:$0xff] }
  0x67   : > { %v1406_v1 = vmax.f32 %v558_v25, %v3040_v38  ;;  %v1495_v4 = vmax.f32 %v1391_v39, %v1399_v46  ;;  %v1496_v19 = vmax.f32 %v1392_v57, %v1400_v54  ;;  %v1497_v41 = vmax.f32 %v1393_v61, %v1401_v53  ;;  %3157 = vmatpush3.msra.mxu0 %v2301_v62 }
  0x68   : > { %v1498_v60 = vmax.f32 %v1394_v43, %v1402_v55  ;;  %v1499_v9 = vmax.f32 %v1395_v45, %v1403_v51  ;;  %2101 = vrot.lane.b32.xlu0 %v3584_v44, %s3356_s16  ;;  %2126 = vrot.lane.b32.xlu1 %v3579_v42, %s3357_s25  ;;  %v1500_v2 = vmax.f32 %v1396_v47, %v1404_v56  ;;  %v2298_v45 = vld [vmem:[%s4382_s1 + $0x20] sm:$0xff]  ;;  %v2297_v51 = vld [vmem:[%s4382_s1 + $0x18] sm:$0xff] }
  0x69   : > { %v1501_v8 = vmax.f32 %v1397_v50, %v1405_v59  ;;  %v1502_v21 = vmax.f32 %v1398_v52, %v1406_v1  ;;  %v1698_v15 = vrot.slane %v1495_v4, %v3472_v22  ;;  %v1702_v63 = vrot.slane %v1496_v19, %v3472_v22  ;;  %3158 = vmatprep.subr.mxu0 %v2300_v3 }
  0x6a   : > { %v1706_v6 = vrot.slane %v1497_v41, %v3472_v22  ;;  %v1710_v10 = vrot.slane %v1498_v60, %v3472_v22  ;;  %v1714_v42 = vrot.slane %v1499_v9, %v3472_v22  ;;  %v1718_v20 = vrot.slane %v1500_v2, %v3472_v22  ;;  %3159 = vmatpush3.msra.mxu0 %v2300_v3 }
  0x6b   : > { %v1722_v23 = vrot.slane %v1501_v8, %v3472_v22  ;;  %v1726_v25 = vrot.slane %v1502_v21, %v3472_v22  ;;  %v1883_v26 = vsel %vm1855_vm3, %v1702_v63, %v1698_v15  ;;  %v559_v27 = vcombine.high %v239_v58, %v239_v58  ;;  %3160 = vmatprep.subr.mxu0 %v2299_v30  ;;  %v2296_v8 = vld [vmem:[%s4382_s1 + $0x10] sm:$0xff] }
  0x6c   : > { %v3650_v28 = vrot.slane %v239_v58, %v3468_v17  ;;  %v576_v29 = vcombine.high %v240_v24, %v240_v24  ;;  %2003 = vrot.lane.b32.xlu0 %v3611_v16, %s3353_s11  ;;  %2050 = vrot.lane.b32.xlu1 %v3589_v48, %s3352_s10  ;;  %v1884_v31 = vsel %vm1857_vm4, %v1706_v6, %v1883_v26  ;;  %v2295_v26 = vld [vmem:[%s4382_s1 + $0x8] sm:$0xff] }
  0x6d   : > { %v3662_v34 = vrot.slane %v240_v24, %v3468_v17  ;;  %v593_v35 = vcombine.high %v241_v11, %v241_v11  ;;  %v1885_v36 = vsel %vm1859_vm5, %v1710_v10, %v1884_v31  ;;  %v3666_v32 = vrot.slane %v559_v27, %v3468_v17  ;;  %3161 = vmatpush3.msra.mxu0 %v2299_v30 }
  0x6e   : > { %v3670_v37 = vcombine.high %v3650_v28, %v3650_v28  ;;  %v3673_v38 = vrot.slane %v576_v29, %v3468_v17  ;;  %v1886_v39 = vsel %vm1861_vm6, %v1714_v42, %v1885_v36  ;;  %v3681_v61 = vrot.slane %v241_v11, %v3468_v17  ;;  %3162 = vmatprep.subr.mxu0 %v2298_v45 }
  0x6f   : > { %v3678_v57 = vcombine.high %v3662_v34, %v3662_v34  ;;  %v3684_v43 = vrot.slane %v593_v35, %v3468_v17  ;;  %v1887_v47 = vsel %vm1863_vm7, %v1718_v20, %v1886_v39  ;;  %v575_v49 = vcombine.high %v3666_v32, %v3666_v32  ;;  %3163 = vmatpush3.msra.mxu0 %v2298_v45  ;;  %v2294_v45 = vld [vmem:[%s4382_s1] sm:$0xff] }
  0x70   : > { %v592_v50 = vcombine.high %v3673_v38, %v3673_v38  ;;  %v610_v52 = vcombine.high %v242_v33, %v242_v33  ;;  %2128 = vrot.lane.b32.xlu0 %v3589_v48, %s3357_s25  ;;  %2174 = vrot.lane.b32.xlu1 %v3584_v44, %s3358_s15  ;;  %v1888_v46 = vsel %vm1865_vm8, %v1722_v23, %v1887_v47  ;;  %v3041_v55 = vrot.slane %v3650_v28, 9 }
  0x71   : > { %v608_v54 = vcombine.high %v3681_v61, %v3681_v61  ;;  %v609_v53 = vcombine.high %v3684_v43, %v3684_v43  ;;  %v1889_v56 = vsel %vm1867_vm9, %v1726_v25, %v1888_v46  ;;  %v617_v59 = vrot.slane %v242_v33, %v3468_v17  ;;  %3164 = vmatprep.subr.mxu0 %v2297_v51 }
  0x72   : > { %v624_v44 = vrot.slane %v610_v52, %v3468_v17  ;;  %v3042_v1 = vrot.slane %v3670_v37, 9  ;;  %v1923_v4 = vrot.slane %v1889_v56, 7  ;;  %v3043_v19 = vrot.slane %v3666_v32, 9  ;;  %3165 = vmatpush3.msra.mxu0 %v2297_v51 }
  0x73   : > { %v3044_v41 = vrot.slane %v575_v49, 9  ;;  %v3045_v60 = vrot.slane %v3662_v34, 9  ;;  %v625_v9 = vcombine.high %v617_v59, %v617_v59  ;;  %v3046_v62 = vrot.slane %v3678_v57, 9  ;;  %3166 = vmatprep.subr.mxu0 %v2296_v8 }
  0x74   : > { %v626_v58 = vcombine.high %v624_v44, %v624_v44  ;;  %v3047_v2 = vrot.slane %v3673_v38, 9  ;;  %2052 = vrot.lane.b32.xlu0 %v3614_v18, %s3352_s10  ;;  %2103 = vrot.lane.b32.xlu1 %v3611_v16, %s3356_s16  ;;  %v3723_v21 = vsel %vm1937_vm0, 0.0, %v1923_v4  ;;  %v1951_v24 = vsel %vm1937_vm0, %v1923_v4, 0.0 }
  0x75   : > { %v3048_v3 = vrot.slane %v592_v50, 9  ;;  %v3049_v15 = vrot.slane %v3681_v61, 9  ;;  %v1985_v63 = vrot.slane %v3723_v21, 1  ;;  %v1986_v6 = vrot.slane %v1951_v24, 1  ;;  %3167 = vmatpush3.msra.mxu0 %v2296_v8 }
  0x76   : > { %v2034_v10 = vrot.slane %v3723_v21, 2  ;;  %v2035_v11 = vrot.slane %v1951_v24, 2  ;;  %v3050_v42 = vrot.slane %v608_v54, 9  ;;  %v3051_v20 = vrot.slane %v3684_v43, 9  ;;  %3168 = vmatprep.subr.mxu0 %v2295_v26 }
  0x77   : > { %v3052_v23 = vrot.slane %v609_v53, 9  ;;  %v3053_v25 = vrot.slane %v617_v59, 9  ;;  %v3734_v27 = vsel %vm1972_vm2, %v1985_v63, %v1986_v6  ;;  %v3054_v30 = vrot.slane %v625_v9, 9  ;;  %3169 = vmatpush3.msra.mxu0 %v2295_v26 }
  0x78   : > { %v3737_v29 = vsel %vm2021_vm1, %v2034_v10, %v2035_v11  ;;  %v3055_v31 = vrot.slane %v624_v44, 9  ;;  %2077 = vrot.lane.b32.xlu0 %v3723_v21, %s3354_s12  ;;  %2198 = vrot.lane.b32.xlu1 %v3589_v48, %s3359_s8  ;;  %v3056_v33 = vrot.slane %v626_v58, 9  ;;  %v1407_v35 = vmax.f32 %v3650_v28, %v3041_v55 }
  0x79   : > { %v1408_v36 = vmax.f32 %v3670_v37, %v3042_v1  ;;  %v1409_v39 = vmax.f32 %v3666_v32, %v3043_v19  ;;  %v1410_v47 = vmax.f32 %v575_v49, %v3044_v41  ;;  %v1411_v52 = vmax.f32 %v3662_v34, %v3045_v60  ;;  %3170 = vmatprep.subr.mxu0 %v2294_v45  ;;  %v243_v19 = vld [vmem:[%s3460_s9 + $0xa0] sm:$0xff] }
  0x7a   : > { %v1412_v46 = vmax.f32 %v3678_v57, %v3046_v62  ;;  %v1413_v51 = vmax.f32 %v3673_v38, %v3047_v2  ;;  %v1414_v48 = vmax.f32 %v592_v50, %v3048_v3  ;;  %v1415_v56 = vmax.f32 %v3681_v61, %v3049_v15  ;;  %3171 = vmatpush3.msra.mxu0 %v2294_v45  ;;  %v245_v62 = vld [vmem:[%s3460_s9 + $0xb0] sm:$0xff] }
  0x7b   : > { %v1416_v28 = vmax.f32 %v608_v54, %v3050_v42  ;;  %v1417_v37 = vmax.f32 %v3684_v43, %v3051_v20  ;;  %v1418_v32 = vmax.f32 %v609_v53, %v3052_v23  ;;  %v1419_v55 = vmax.f32 %v617_v59, %v3053_v25  ;;  %v246_v25 = vld [vmem:[%s3460_s9 + $0xb8] sm:$0xff] }
  0x7c   : > { %v1420_v1 = vmax.f32 %v625_v9, %v3054_v30  ;;  %v1421_v4 = vmax.f32 %v624_v44, %v3055_v31  ;;  %2176 = vrot.lane.b32.xlu0 %v3611_v16, %s3358_s15  ;;  %2105 = vrot.lane.b32.xlu1 %v3734_v27, %s3356_s16  ;;  %v1422_v34 = vmax.f32 %v626_v58, %v3056_v33  ;;  %v244_v16 = vld [vmem:[%s3460_s9 + $0xa8] sm:$0xff] }
  0x7d   : > { %v1503_v38 = vmax.f32 %v1407_v35, %v1415_v56  ;;  %v1504_v57 = vmax.f32 %v1408_v36, %v1416_v28  ;;  %v1505_v61 = vmax.f32 %v1409_v39, %v1417_v37  ;;  %v1506_v43 = vmax.f32 %v1410_v47, %v1418_v32 }
  0x7e   : > { %v1507_v49 = vmax.f32 %v1411_v52, %v1419_v55  ;;  %v1508_v50 = vmax.f32 %v1412_v46, %v1420_v1  ;;  %v1509_v54 = vmax.f32 %v1413_v51, %v1421_v4  ;;  %v1510_v53 = vmax.f32 %v1414_v48, %v1422_v34 }
  0x7f   : > { %v1730_v59 = vrot.slane %v1503_v38, %v3472_v22  ;;  %v1734_v44 = vrot.slane %v1504_v57, %v3472_v22  ;;  %v1738_v41 = vrot.slane %v1505_v61, %v3472_v22  ;;  %v1742_v60 = vrot.slane %v1506_v43, %v3472_v22 }
  0x80   : > { %v1746_v9 = vrot.slane %v1507_v49, %v3472_v22  ;;  %v1750_v58 = vrot.slane %v1508_v50, %v3472_v22  ;;  %2005 = vrot.lane.b32.xlu0 %v3734_v27, %s3353_s11  ;;  %2200 = vrot.lane.b32.xlu1 %v3614_v18, %s3359_s8  ;;  %v1754_v2 = vrot.slane %v1509_v54, %v3472_v22 }
  0x81   : > { %v1758_v8 = vrot.slane %v1510_v53, %v3472_v22  ;;  %v1890_v24 = vsel %vm1855_vm3, %v1734_v44, %v1730_v59  ;;  %v627_v15 = vcombine.high %v243_v19, %v243_v19  ;;  %v634_v63 = vrot.slane %v243_v19, %v3468_v17 }
  0x82   : > { %v1891_v3 = vsel %vm1857_vm4, %v1738_v41, %v1890_v24  ;;  %v644_v6 = vcombine.high %v244_v16, %v244_v16  ;;  %v651_v11 = vrot.slane %v244_v16, %v3468_v17  ;;  %v661_v42 = vcombine.high %v245_v62, %v245_v62 }
  0x83   : > { %v1892_v10 = vsel %vm1859_vm5, %v1742_v60, %v1891_v3  ;;  %v668_v20 = vrot.slane %v245_v62, %v3468_v17  ;;  %v641_v26 = vrot.slane %v627_v15, %v3468_v17  ;;  %v642_v30 = vcombine.high %v634_v63, %v634_v63 }
  0x84   : > { %v1893_v23 = vsel %vm1861_vm6, %v1746_v9, %v1892_v10  ;;  %v658_v31 = vrot.slane %v644_v6, %v3468_v17  ;;  %2130 = vrot.lane.b32.xlu0 %v3614_v18, %s3357_s25  ;;  %2054 = vrot.lane.b32.xlu1 %v3737_v29, %s3352_s10  ;;  %v659_v35 = vcombine.high %v651_v11, %v651_v11  ;;  %v3057_v39 = vrot.slane %v634_v63, 9 }
  0x85   : > { %v1894_v33 = vsel %vm1863_vm7, %v1750_v58, %v1893_v23  ;;  %v675_v36 = vrot.slane %v661_v42, %v3468_v17  ;;  %v643_v47 = vcombine.high %v641_v26, %v641_v26  ;;  %v676_v46 = vcombine.high %v668_v20, %v668_v20 }
  0x86   : > { %v1895_v45 = vsel %vm1865_vm8, %v1754_v2, %v1894_v33  ;;  %v660_v52 = vcombine.high %v658_v31, %v658_v31  ;;  %v678_v56 = vcombine.high %v246_v25, %v246_v25  ;;  %v685_v18 = vrot.slane %v246_v25, %v3468_v17 }
  0x87   : > { %v1896_v51 = vsel %vm1867_vm9, %v1758_v8, %v1895_v45  ;;  %v677_v48 = vcombine.high %v675_v36, %v675_v36  ;;  %v3058_v37 = vrot.slane %v642_v30, 9  ;;  %v3059_v32 = vrot.slane %v641_v26, 9 }
  0x88   : > { %v1924_v28 = vrot.slane %v1896_v51, 7  ;;  %v3060_v55 = vrot.slane %v643_v47, 9  ;;  %2154 = vrot.lane.b32.xlu1 %v3723_v21, %s3355_s13  ;;  %v692_v1 = vrot.slane %v678_v56, %v3468_v17  ;;  %v693_v4 = vcombine.high %v685_v18, %v685_v18 }
  0x89   : > { %v3061_v34 = vrot.slane %v651_v11, 9  ;;  %v3062_v38 = vrot.slane %v659_v35, 9  ;;  %v3063_v43 = vrot.slane %v658_v31, 9  ;;  %v3064_v49 = vrot.slane %v660_v52, 9 }
  0x8a   : > { %v3796_v57 = vsel %vm1937_vm0, 0.0, %v1924_v28  ;;  %v1952_v61 = vsel %vm1937_vm0, %v1924_v28, 0.0  ;;  %v694_v44 = vcombine.high %v692_v1, %v692_v1  ;;  %v3065_v19 = vrot.slane %v668_v20, 9 }
  0x8b   : > { %v1988_v50 = vrot.slane %v3796_v57, 1  ;;  %v1989_v54 = vrot.slane %v1952_v61, 1  ;;  %v2037_v53 = vrot.slane %v3796_v57, 2  ;;  %v2038_v59 = vrot.slane %v1952_v61, 2 }
  0x8c   : > { %v3066_v16 = vrot.slane %v676_v46, 9  ;;  %v3067_v41 = vrot.slane %v675_v36, 9  ;;  %2079 = vrot.lane.b32.xlu1 %v3796_v57, %s3354_s12  ;;  %v3068_v58 = vrot.slane %v677_v48, 9  ;;  %v3069_v62 = vrot.slane %v685_v18, 9 }
  0x8d   : > { %v3802_v60 = vsel %vm1972_vm2, %v1988_v50, %v1989_v54  ;;  %v3807_v9 = vsel %vm2021_vm1, %v2037_v53, %v2038_v59  ;;  %v3070_v2 = vrot.slane %v693_v4, 9  ;;  %v3071_v8 = vrot.slane %v692_v1, 9  ;;  %v250_v59 = vld [vmem:[%s3460_s9 + $0xd8] sm:$0xff] }
  0x8e   : > { %2007 = vrot.lane.b32.xlu0 %v3802_v60, %s3353_s11  ;;  %v3072_v24 = vrot.slane %v694_v44, 9  ;;  %v1423_v3 = vmax.f32 %v634_v63, %v3057_v39  ;;  %v1424_v15 = vmax.f32 %v642_v30, %v3058_v37  ;;  %v1425_v6 = vmax.f32 %v641_v26, %v3059_v32 }
  0x8f   : > { %v1426_v10 = vmax.f32 %v643_v47, %v3060_v55  ;;  %v1427_v42 = vmax.f32 %v651_v11, %v3061_v34  ;;  %v1428_v23 = vmax.f32 %v659_v35, %v3062_v38  ;;  %v1429_v25 = vmax.f32 %v658_v31, %v3063_v43  ;;  %v247_v47 = vld [vmem:[%s3460_s9 + $0xc0] sm:$0xff]  ;;  %v249_v55 = vld [vmem:[%s3460_s9 + $0xd0] sm:$0xff] }
  0x90   : > { %v1430_v33 = vmax.f32 %v660_v52, %v3064_v49  ;;  %v1431_v45 = vmax.f32 %v668_v20, %v3065_v19  ;;  %2178 = vrot.lane.b32.xlu1 %v3734_v27, %s3358_s15  ;;  %v1432_v51 = vmax.f32 %v676_v46, %v3066_v16  ;;  %v1433_v56 = vmax.f32 %v675_v36, %v3067_v41  ;;  %v248_v46 = vld [vmem:[%s3460_s9 + $0xc8] sm:$0xff] }
  0x91   : > { %v1434_v28 = vmax.f32 %v677_v48, %v3068_v58  ;;  %v1435_v61 = vmax.f32 %v685_v18, %v3069_v62  ;;  %v1436_v63 = vmax.f32 %v693_v4, %v3070_v2  ;;  %v1437_v26 = vmax.f32 %v692_v1, %v3071_v8 }
  0x92   : > { %2132 = vrot.lane.b32.xlu0 %v3737_v29, %s3357_s25  ;;  %v1438_v30 = vmax.f32 %v694_v44, %v3072_v24  ;;  %v1511_v11 = vmax.f32 %v1423_v3, %v1431_v45  ;;  %v1512_v31 = vmax.f32 %v1424_v15, %v1432_v51  ;;  %v1513_v35 = vmax.f32 %v1425_v6, %v1433_v56 }
  0x93   : > { %v1514_v39 = vmax.f32 %v1426_v10, %v1434_v28  ;;  %v1515_v20 = vmax.f32 %v1427_v42, %v1435_v61  ;;  %v1516_v52 = vmax.f32 %v1428_v23, %v1436_v63  ;;  %v1517_v27 = vmax.f32 %v1429_v25, %v1437_v26 }
  0x94   : > { %v1762_v36 = vrot.slane %v1511_v11, %v3472_v22  ;;  %2107 = vrot.lane.b32.xlu1 %v3802_v60, %s3356_s16  ;;  %v1518_v48 = vmax.f32 %v1430_v33, %v1438_v30  ;;  %v1766_v18 = vrot.slane %v1512_v31, %v3472_v22  ;;  %v1770_v37 = vrot.slane %v1513_v35, %v3472_v22 }
  0x95   : > { %v1774_v32 = vrot.slane %v1514_v39, %v3472_v22  ;;  %v1778_v1 = vrot.slane %v1515_v20, %v3472_v22  ;;  %v1782_v4 = vrot.slane %v1516_v52, %v3472_v22  ;;  %v1786_v34 = vrot.slane %v1517_v27, %v3472_v22 }
  0x96   : > { %2056 = vrot.lane.b32.xlu0 %v3807_v9, %s3352_s10  ;;  %v695_v38 = vcombine.high %v247_v47, %v247_v47  ;;  %v1897_v43 = vsel %vm1855_vm3, %v1766_v18, %v1762_v36  ;;  %v702_v49 = vrot.slane %v247_v47, %v3468_v17  ;;  %v712_v50 = vcombine.high %v248_v46, %v248_v46 }
  0x97   : > { %v719_v54 = vrot.slane %v248_v46, %v3468_v17  ;;  %v1898_v53 = vsel %vm1857_vm4, %v1770_v37, %v1897_v43  ;;  %v729_v19 = vcombine.high %v249_v55, %v249_v55  ;;  %v736_v16 = vrot.slane %v249_v55, %v3468_v17 }
  0x98   : > { %v709_v44 = vrot.slane %v695_v38, %v3468_v17  ;;  %v1790_v41 = vrot.slane %v1518_v48, %v3472_v22  ;;  %v1899_v58 = vsel %vm1859_vm5, %v1774_v32, %v1898_v53  ;;  %2202 = vrot.lane.b32.xlu1 %v3737_v29, %s3359_s8  ;;  %v710_v62 = vcombine.high %v702_v49, %v702_v49 }
  0x99   : > { %v726_v2 = vrot.slane %v712_v50, %v3468_v17  ;;  %v1900_v8 = vsel %vm1861_vm6, %v1778_v1, %v1899_v58  ;;  %v727_v3 = vcombine.high %v719_v54, %v719_v54  ;;  %v743_v15 = vrot.slane %v729_v19, %v3468_v17 }
  0x9a   : > { %2156 = vrot.lane.b32.xlu0 %v3796_v57, %s3355_s13  ;;  %v711_v24 = vcombine.high %v709_v44, %v709_v44  ;;  %v1901_v6 = vsel %vm1863_vm7, %v1782_v4, %v1900_v8  ;;  %v746_v42 = vcombine.high %v250_v59, %v250_v59  ;;  %v753_v23 = vrot.slane %v250_v59, %v3468_v17 }
  0x9b   : > { %v728_v10 = vcombine.high %v726_v2, %v726_v2  ;;  %v1902_v29 = vsel %vm1865_vm8, %v1786_v34, %v1901_v6  ;;  %v744_v25 = vcombine.high %v736_v16, %v736_v16  ;;  %v745_v33 = vcombine.high %v743_v15, %v743_v15 }
  0x9c   : > { %v3073_v45 = vrot.slane %v702_v49, 9  ;;  %v1903_v51 = vsel %vm1867_vm9, %v1790_v41, %v1902_v29  ;;  %v760_v56 = vrot.slane %v746_v42, %v3468_v17  ;;  %v761_v28 = vcombine.high %v753_v23, %v753_v23 }
  0x9d   : > { %v3074_v61 = vrot.slane %v710_v62, 9  ;;  %v1925_v63 = vrot.slane %v1903_v51, 7  ;;  %v3075_v26 = vrot.slane %v709_v44, 9  ;;  %v3076_v30 = vrot.slane %v711_v24, 9 }
  0x9e   : > { %v3077_v11 = vrot.slane %v719_v54, 9  ;;  %v762_v31 = vcombine.high %v760_v56, %v760_v56  ;;  %v3078_v35 = vrot.slane %v727_v3, 9  ;;  %v3079_v39 = vrot.slane %v726_v2, 9 }
  0x9f   : > { %v3080_v20 = vrot.slane %v728_v10, 9  ;;  %v3851_v47 = vsel %vm1937_vm0, 0.0, %v1925_v63  ;;  %v1953_v52 = vsel %vm1937_vm0, %v1925_v63, 0.0  ;;  %v3081_v27 = vrot.slane %v736_v16, 9 }
  0xa0   : > { %v3082_v36 = vrot.slane %v744_v25, 9  ;;  %2081 = vrot.lane.b32.xlu0 %v3851_v47, %s3354_s12  ;;  %v1991_v46 = vrot.slane %v3851_v47, 1  ;;  %v1992_v48 = vrot.slane %v1953_v52, 1  ;;  %v2040_v18 = vrot.slane %v3851_v47, 2 }
  0xa1   : > { %v3083_v37 = vrot.slane %v743_v15, 9  ;;  %v2041_v32 = vrot.slane %v1953_v52, 2  ;;  %v3084_v55 = vrot.slane %v745_v33, 9  ;;  %v3085_v1 = vrot.slane %v753_v23, 9 }
  0xa2   : > { %v3086_v4 = vrot.slane %v761_v28, 9  ;;  %v3859_v34 = vsel %vm1972_vm2, %v1991_v46, %v1992_v48  ;;  %v3087_v38 = vrot.slane %v760_v56, 9  ;;  %v3088_v43 = vrot.slane %v762_v31, 9  ;;  %v254_v48 = vld [vmem:[%s3460_s9 + $0xf8] sm:$0xff] }
  0xa3   : > { %v1439_v50 = vmax.f32 %v702_v49, %v3073_v45  ;;  %2109 = vrot.lane.b32.xlu1 %v3859_v34, %s3356_s16  ;;  %v1440_v53 = vmax.f32 %v710_v62, %v3074_v61  ;;  %v1441_v59 = vmax.f32 %v709_v44, %v3075_v26  ;;  %v1442_v19 = vmax.f32 %v711_v24, %v3076_v30  ;;  %v251_v24 = vld [vmem:[%s3460_s9 + $0xe0] sm:$0xff]  ;;  %v253_v61 = vld [vmem:[%s3460_s9 + $0xf0] sm:$0xff] }
  0xa4   : > { %v1443_v41 = vmax.f32 %v719_v54, %v3077_v11  ;;  %2180 = vrot.lane.b32.xlu0 %v3802_v60, %s3358_s15  ;;  %v1444_v58 = vmax.f32 %v727_v3, %v3078_v35  ;;  %v1445_v8 = vmax.f32 %v726_v2, %v3079_v39  ;;  %v1446_v6 = vmax.f32 %v728_v10, %v3080_v20 }
  0xa5   : > { %v1447_v42 = vmax.f32 %v736_v16, %v3081_v27  ;;  %v1448_v29 = vmax.f32 %v744_v25, %v3082_v36  ;;  %v1449_v51 = vmax.f32 %v743_v15, %v3083_v37  ;;  %v1450_v63 = vmax.f32 %v745_v33, %v3084_v55 }
  0xa6   : > { %v1451_v52 = vmax.f32 %v753_v23, %v3085_v1  ;;  %v1452_v49 = vmax.f32 %v761_v28, %v3086_v4  ;;  %v1453_v45 = vmax.f32 %v760_v56, %v3087_v38  ;;  %v1454_v46 = vmax.f32 %v762_v31, %v3088_v43  ;;  %v252_v23 = vld [vmem:[%s3460_s9 + $0xe8] sm:$0xff]  ;;  %s3362_s9 = smov [#allocation2]  }
  0xa7   : > { %v1519_v62 = vmax.f32 %v1439_v50, %v1447_v42  ;;  %2204 = vrot.lane.b32.xlu1 %v3807_v9, %s3359_s8  ;;  %v1520_v54 = vmax.f32 %v1440_v53, %v1448_v29  ;;  %v1521_v60 = vmax.f32 %v1441_v59, %v1449_v51  ;;  %v1522_v44 = vmax.f32 %v1442_v19, %v1450_v63 }
  0xa8   : > { %v1523_v2 = vmax.f32 %v1443_v41, %v1451_v52  ;;  %2009 = vrot.lane.b32.xlu0 %v3859_v34, %s3353_s11  ;;  %v3871_v16 = vsel %vm2021_vm1, %v2040_v18, %v2041_v32  ;;  %v1524_v3 = vmax.f32 %v1444_v58, %v1452_v49  ;;  %v1525_v15 = vmax.f32 %v1445_v8, %v1453_v45 }
  0xa9   : > { %v1794_v10 = vrot.slane %v1519_v62, %v3472_v22  ;;  %v1526_v25 = vmax.f32 %v1446_v6, %v1454_v46  ;;  %v1798_v33 = vrot.slane %v1520_v54, %v3472_v22  ;;  %v1802_v56 = vrot.slane %v1521_v60, %v3472_v22 }
  0xaa   : > { %v1806_v28 = vrot.slane %v1522_v44, %v3472_v22  ;;  %v1810_v26 = vrot.slane %v1523_v2, %v3472_v22  ;;  %v1814_v30 = vrot.slane %v1524_v3, %v3472_v22  ;;  %v1818_v11 = vrot.slane %v1525_v15, %v3472_v22 }
  0xab   : > { %v763_v31 = vcombine.high %v251_v24, %v251_v24  ;;  %2058 = vrot.lane.b32.xlu1 %v3871_v16, %s3352_s10  ;;  %v1904_v35 = vsel %vm1855_vm3, %v1798_v33, %v1794_v10  ;;  %v770_v39 = vrot.slane %v251_v24, %v3468_v17  ;;  %v780_v20 = vcombine.high %v252_v23, %v252_v23 }
  0xac   : > { %v787_v27 = vrot.slane %v252_v23, %v3468_v17  ;;  %2134 = vrot.lane.b32.xlu0 %v3807_v9, %s3357_s25  ;;  %v1905_v36 = vsel %vm1857_vm4, %v1802_v56, %v1904_v35  ;;  %v797_v37 = vcombine.high %v253_v61, %v253_v61  ;;  %v804_v32 = vrot.slane %v253_v61, %v3468_v17 }
  0xad   : > { %v777_v18 = vrot.slane %v763_v31, %v3468_v17  ;;  %v1822_v55 = vrot.slane %v1526_v25, %v3472_v22  ;;  %v1906_v1 = vsel %vm1859_vm5, %v1806_v28, %v1905_v36  ;;  %v778_v4 = vcombine.high %v770_v39, %v770_v39 }
  0xae   : > { %v794_v38 = vrot.slane %v780_v20, %v3468_v17  ;;  %v1907_v43 = vsel %vm1861_vm6, %v1810_v26, %v1906_v1  ;;  %v795_v53 = vcombine.high %v787_v27, %v787_v27  ;;  %v811_v9 = vrot.slane %v797_v37, %v3468_v17 }
  0xaf   : > { %v779_v50 = vcombine.high %v777_v18, %v777_v18  ;;  %v1908_v59 = vsel %vm1863_vm7, %v1814_v30, %v1907_v43  ;;  %2158 = vrot.lane.b32.xlu1 %v3851_v47, %s3355_s13  ;;  %v814_v41 = vcombine.high %v254_v48, %v254_v48  ;;  %v821_v58 = vrot.slane %v254_v48, %v3468_v17 }
  0xb0   : > { %v796_v19 = vcombine.high %v794_v38, %v794_v38  ;;  %v1909_v8 = vsel %vm1865_vm8, %v1818_v11, %v1908_v59  ;;  %v812_v6 = vcombine.high %v804_v32, %v804_v32  ;;  %v813_v42 = vcombine.high %v811_v9, %v811_v9 }
  0xb1   : > { %v3089_v29 = vrot.slane %v770_v39, 9  ;;  %v1910_v51 = vsel %vm1867_vm9, %v1822_v55, %v1909_v8  ;;  %v828_v63 = vrot.slane %v814_v41, %v3468_v17  ;;  %v829_v52 = vcombine.high %v821_v58, %v821_v58 }
  0xb2   : > { %v3090_v49 = vrot.slane %v778_v4, 9  ;;  %v1926_v45 = vrot.slane %v1910_v51, 7  ;;  %v3091_v46 = vrot.slane %v777_v18, 9  ;;  %v3092_v62 = vrot.slane %v779_v50, 9 }
  0xb3   : > { %v3093_v54 = vrot.slane %v787_v27, 9  ;;  %v830_v60 = vcombine.high %v828_v63, %v828_v63  ;;  %v3094_v44 = vrot.slane %v795_v53, 9  ;;  %v3095_v2 = vrot.slane %v794_v38, 9 }
  0xb4   : > { %v3096_v24 = vrot.slane %v796_v19, 9  ;;  %v3906_v3 = vsel %vm1937_vm0, 0.0, %v1926_v45  ;;  %v1954_v15 = vsel %vm1937_vm0, %v1926_v45, 0.0  ;;  %v3097_v10 = vrot.slane %v804_v32, 9 }
  0xb5   : > { %v3098_v23 = vrot.slane %v812_v6, 9  ;;  %v1994_v25 = vrot.slane %v3906_v3, 1  ;;  %v1995_v17 = vrot.slane %v1954_v15, 1  ;;  %2083 = vrot.lane.b32.xlu1 %v3906_v3, %s3354_s12  ;;  %v2043_v33 = vrot.slane %v3906_v3, 2 }
  0xb6   : > { %v3099_v56 = vrot.slane %v811_v9, 9  ;;  %v2044_v28 = vrot.slane %v1954_v15, 2  ;;  %v3100_v61 = vrot.slane %v813_v42, 9  ;;  %v3101_v26 = vrot.slane %v821_v58, 9 }
  0xb7   : > { %v3102_v30 = vrot.slane %v829_v52, 9  ;;  %v3914_v11 = vsel %vm1972_vm2, %v1994_v25, %v1995_v17  ;;  %v3103_v31 = vrot.slane %v828_v63, 9  ;;  %v3104_v35 = vrot.slane %v830_v60, 9 }
  0xb8   : > { %v1455_v20 = vmax.f32 %v770_v39, %v3089_v29  ;;  %2011 = vrot.lane.b32.xlu0 %v3914_v11, %s3353_s11  ;;  %v1456_v36 = vmax.f32 %v778_v4, %v3090_v49  ;;  %v1457_v48 = vmax.f32 %v777_v18, %v3091_v46  ;;  %v1458_v37 = vmax.f32 %v779_v50, %v3092_v62 }
  0xb9   : > { %v1459_v55 = vmax.f32 %v787_v27, %v3093_v54  ;;  %2182 = vrot.lane.b32.xlu1 %v3859_v34, %s3358_s15  ;;  %v1460_v1 = vmax.f32 %v795_v53, %v3094_v44  ;;  %v1461_v43 = vmax.f32 %v794_v38, %v3095_v2  ;;  %v1462_v59 = vmax.f32 %v796_v19, %v3096_v24  ;;  %v3922_v34 = vpop.permute.xlu1 %2046  ;;  %v1998_v44 = vpop.permute.xlu0 %1997 }
  0xba   : > { %v1463_v41 = vmax.f32 %v804_v32, %v3097_v10  ;;  %v1464_v8 = vmax.f32 %v812_v6, %v3098_v23  ;;  %v1465_v51 = vmax.f32 %v811_v9, %v3099_v56  ;;  %v1466_v45 = vmax.f32 %v813_v42, %v3100_v61 }
  0xbb   : > { %v1467_v15 = vmax.f32 %v821_v58, %v3101_v26  ;;  %v1468_v25 = vmax.f32 %v829_v52, %v3102_v30  ;;  %v1469_v39 = vmax.f32 %v828_v63, %v3103_v31  ;;  %v1470_v29 = vmax.f32 %v830_v60, %v3104_v35 }
  0xbc   : > { %v1527_v17 = vmax.f32 %v1455_v20, %v1463_v41  ;;  %2136 = vrot.lane.b32.xlu0 %v3871_v16, %s3357_s25  ;;  %v1528_v18 = vmax.f32 %v1456_v36, %v1464_v8  ;;  %v1529_v27 = vmax.f32 %v1457_v48, %v1465_v51  ;;  %v1530_v4 = vmax.f32 %v1458_v37, %v1466_v45 }
  0xbd   : > { %v1531_v50 = vmax.f32 %v1459_v55, %v1467_v15  ;;  %v2045_v38 = vsel %vm2021_vm1, %v2043_v33, %v2044_v28  ;;  %2111 = vrot.lane.b32.xlu1 %v3914_v11, %s3356_s16  ;;  %v1532_v32 = vmax.f32 %v1460_v1, %v1468_v25  ;;  %v1533_v53 = vmax.f32 %v1461_v43, %v1469_v39  ;;  %v3941_v2 = vpop.permute.xlu1 %2073 }
  0xbe   : > { %v1826_v9 = vrot.slane %v1527_v17, %v3472_v22  ;;  %v1534_v19 = vmax.f32 %v1462_v59, %v1470_v29  ;;  %v1830_v58 = vrot.slane %v1528_v18, %v3472_v22  ;;  %v1834_v6 = vrot.slane %v1529_v27, %v3472_v22 }
  0xbf   : > { %v1838_v42 = vrot.slane %v1530_v4, %v3472_v22  ;;  %v1842_v63 = vrot.slane %v1531_v50, %v3472_v22  ;;  %v1846_v52 = vrot.slane %v1532_v32, %v3472_v22  ;;  %v1850_v46 = vrot.slane %v1533_v53, %v3472_v22 }
  0xc0   : > { %2060 = vrot.lane.b32.xlu0 %v2045_v38, %s3352_s10  ;;  %v1911_v49 = vsel %vm1855_vm3, %v1830_v58, %v1826_v9  ;;  %v1854_v54 = vrot.slane %v1534_v19, %v3472_v22  ;;  %v2072_v22 = vpop.permute.xlu0 %2071  ;;  %v2223_v45 = vsel %vm2222_vm10, %v3445_v5, %v1998_v44  ;;  %vm2276_vm3 = vcmask 457728  }
  0xc1   : > { %v1912_v62 = vsel %vm1857_vm4, %v1834_v6, %v1911_v49  ;;  %2206 = vrot.lane.b32.xlu1 %v3871_v16, %s3359_s8  ;;  %v2151_v56 = vpop.permute.xlu1 %2150  ;;  %vm2285_vm4 = vcmask 523264  }
  0xc2   : > { %v1913_v60 = vsel %vm1859_vm5, %v1838_v42, %v1912_v62  ;;  %vm2310_vm5 = vcmask 588800  }
  0xc3   : > { %v1914_v24 = vsel %vm1861_vm6, %v1842_v63, %v1913_v60 }
  0xc4   : > { %2160 = vrot.lane.b32.xlu0 %v3906_v3, %s3355_s13  ;;  %v1915_v10 = vsel %vm1863_vm7, %v1846_v52, %v1914_v24 }
  0xc5   : > { %v1916_v23 = vsel %vm1865_vm8, %v1850_v46, %v1915_v10  ;;  %2138 = vrot.lane.b32.xlu1 %v2045_v38, %s3357_s25 }
  0xc6   : > { %v1917_v16 = vsel %vm1867_vm9, %v1854_v54, %v1916_v23 }
  0xc7   : > { %v1927_v33 = vrot.slane %v1917_v16, 7 }
  0xc9   : > { %v1946_v28 = vsel %vm1937_vm0, 0.0, %v1927_v33  ;;  %v1955_v61 = vsel %vm1937_vm0, %v1927_v33, 0.0 }
  0xca   : > { %2085 = vrot.lane.b32.xlu0 %v1946_v28, %s3354_s12  ;;  %v2123_v26 = vrot.slane %v1946_v28, 2  ;;  %v2124_v30 = vrot.slane %v1955_v61, 2  ;;  %v2096_v31 = vrot.slane %v1946_v28, 1  ;;  %v2097_v35 = vrot.slane %v1955_v61, 1 }
  0xcc   : > { %v2125_v20 = vsel %vm2021_vm1, %v2123_v26, %v2124_v30  ;;  %v2098_v37 = vsel %vm1972_vm2, %v2096_v31, %v2097_v35 }
  0xcd   : > { %2140 = vrot.lane.b32.xlu1 %v2125_v20, %s3357_s25 }
  0xce   : > { %2184 = vrot.lane.b32.xlu0 %v3914_v11, %s3358_s15  ;;  %v2153_v36 = vpop.permute.xlu0 %2152  ;;  %v3957_v48 = vpop.permute.xlu1 %2075 }
  0xd1   : > { %2164 = vrot.lane.b32.xlu1 %v3445_v5, %s3355_s13 }
  0xd2   : > { %2113 = vrot.lane.b32.xlu0 %v2098_v37, %s3356_s16  ;;  %v2000_v55 = vpop.permute.xlu0 %1999  ;;  %v2049_v1 = vpop.permute.xlu1 %2048 }
  0xd3   : > { %v2224_v18 = vsel %vm2222_vm10, %v3549_v40, %v2000_v55 }
  0xd4   : > { %v2233_v27 = vsel %vm2231_vm11, %v2224_v18, %v2049_v1 }
  0xd5   : > { %2188 = vrot.lane.b32.xlu1 %v3455_v14, %s3358_s15  ;;  %v2242_v53 = vsel %vm2240_vm12, %v2233_v27, %v3941_v2 }
  0xd6   : > { %2208 = vrot.lane.b32.xlu0 %v2045_v38, %s3359_s8  ;;  %v2100_v43 = vpop.permute.xlu0 %2099  ;;  %v2002_v59 = vpop.permute.xlu1 %2001 }
  0xd7   : > { %v2225_v2 = vsel %vm2222_vm10, %v3515_v7, %v2002_v59 }
  0xd9   : > { %2212 = vrot.lane.b32.xlu1 %v3452_v13, %s3359_s8  ;;  %v3975_v13 = vsel %vm2231_vm11, %v2223_v45, %v3922_v34 }
  0xda   : > { %2162 = vrot.lane.b32.xlu0 %v1946_v28, %s3355_s13  ;;  %v2102_v11 = vpop.permute.xlu0 %2101  ;;  %v2127_v41 = vpop.permute.xlu1 %2126  ;;  %v2241_v25 = vsel %vm2240_vm12, %v3975_v13, %v2072_v22 }
  0xdb   : > { %v2250_v39 = vsel %vm2249_vm13, %v2241_v25, %v2100_v43  ;;  %v2251_v9 = vsel %vm2249_vm13, %v2242_v53, %v2102_v11 }
  0xdc   : > { %v2259_v29 = vsel %vm2258_vm14, %v2250_v39, %v2127_v41 }
  0xdd   : > { %v2268_v4 = vsel %vm2267_vm15, %v2259_v29, %v2151_v56 }
  0xde   : > { %2186 = vrot.lane.b32.xlu0 %v2098_v37, %s3358_s15  ;;  %v2004_v8 = vpop.permute.xlu0 %2003  ;;  %v2051_v51 = vpop.permute.xlu1 %2050 }
  0xdf   : > { %v2234_v10 = vsel %vm2231_vm11, %v2225_v2, %v2051_v51 }
  0xe0   : > { %v2243_v16 = vsel %vm2240_vm12, %v2234_v10, %v3957_v48 }
  0xe2   : > { %2210 = vrot.lane.b32.xlu0 %v2125_v20, %s3359_s8  ;;  %v2129_v14 = vpop.permute.xlu0 %2128  ;;  %v2175_v15 = vpop.permute.xlu1 %2174  ;;  %v2226_v20 = vsel %vm2222_vm10, %v3600_v12, %v2004_v8 }
  0xe3   : > { %v2277_v50 = vsel %vm2276_vm3, %v2268_v4, %v2175_v15  ;;  %v2260_v40 = vsel %vm2258_vm14, %v2251_v9, %v2129_v14 }
  0xe4   : > { %v2269_v6 = vsel %vm2267_vm15, %v2260_v40, %v2153_v36 }
  0xe6   : > { %v2053_v5 = vpop.permute.xlu0 %2052  ;;  %v2104_v17 = vpop.permute.xlu1 %2103 }
  0xe7   : > { %v2252_v22 = vsel %vm2249_vm13, %v2243_v16, %v2104_v17  ;;  %v2235_v36 = vsel %vm2231_vm11, %v2226_v20, %v2053_v5 }
  0xea   : > { %v2078_v34 = vpop.permute.xlu0 %2077  ;;  %v2199_v38 = vpop.permute.xlu1 %2198 }
  0xeb   : > { %v2286_v32 = vsel %vm2285_vm4, %v2277_v50, %v2199_v38  ;;  %v2244_v48 = vsel %vm2240_vm12, %v2235_v36, %v2078_v34 }
  0xec   : > { %3172 = vmatprep.mubr.msk.f32.mxu0 %vm2310_vm5, %v2286_v32 }
  0xee   : > { %v2177_v19 = vpop.permute.xlu0 %2176  ;;  %v2106_v58 = vpop.permute.xlu1 %2105 }
  0xef   : > { %v2278_v42 = vsel %vm2276_vm3, %v2269_v6, %v2177_v19  ;;  %v2253_v55 = vsel %vm2249_vm13, %v2244_v48, %v2106_v58 }
  0xf2   : > { %v2201_v63 = vpop.permute.xlu1 %2200  ;;  %v2006_v52 = vpop.permute.xlu0 %2005 }
  0xf3   : > { %v2287_v49 = vsel %vm2285_vm4, %v2278_v42, %v2201_v63  ;;  %v2227_v29 = vsel %vm2222_vm10, %v3723_v21, %v2006_v52 }
  0xf4   : > { %3173 = vmatmul.mubr.msk.f32.vlgmr.msra.gmra.mxu0 %vm2310_vm5, %v2287_v49 }
  0xf6   : > { %v2055_v46 = vpop.permute.xlu1 %2054  ;;  %v2131_v62 = vpop.permute.xlu0 %2130 }
  0xf7   : > { %v2261_v28 = vsel %vm2258_vm14, %v2252_v22, %v2131_v62  ;;  %v2236_v5 = vsel %vm2231_vm11, %v2227_v29, %v2055_v46 }
  0xfa   : > { %v2155_v54 = vpop.permute.xlu1 %2154 }
  0xfb   : > { %v2270_v61 = vsel %vm2267_vm15, %v2261_v28, %v2155_v54 }
  0xfe   : > { %v2080_v60 = vpop.permute.xlu1 %2079 }
  0xff   : > { %v2245_v18 = vsel %vm2240_vm12, %v2236_v5, %v2080_v60 }
 0x100   : > { %v2008_v44 = vpop.permute.xlu0 %2007 }
 0x101   : > { %v2228_v42 = vsel %vm2222_vm10, %v3796_v57, %v2008_v44 }
 0x102   : > { %v2179_v24 = vpop.permute.xlu1 %2178 }
 0x103   : > { %v2279_v26 = vsel %vm2276_vm3, %v2270_v61, %v2179_v24 }
 0x104   : > { %v2133_v23 = vpop.permute.xlu0 %2132 }
 0x105   : > { %v2262_v43 = vsel %vm2258_vm14, %v2253_v55, %v2133_v23 }
 0x106   : > { %v2108_v33 = vpop.permute.xlu1 %2107 }
 0x107   : > { %v2254_v4 = vsel %vm2249_vm13, %v2245_v18, %v2108_v33 }
 0x108   : > { %v2057_v56 = vpop.permute.xlu0 %2056 }
 0x109   : > { %v2237_v63 = vsel %vm2231_vm11, %v2228_v42, %v2057_v56 }
 0x10a   : > { %v2203_v30 = vpop.permute.xlu1 %2202 }
 0x10b   : > { %v2288_v7 = vsel %vm2285_vm4, %v2279_v26, %v2203_v30 }
 0x10c   : > { %v2157_v31 = vpop.permute.xlu0 %2156  ;;  %3175 = vmatprep.mubr.msk.f32.mxu0 %vm2310_vm5, %v2288_v7 }
 0x10d   : > { %v2271_v59 = vsel %vm2267_vm15, %v2262_v43, %v2157_v31 }
 0x112   : > { %v2082_v35 = vpop.permute.xlu0 %2081 }
 0x113   : > { %v2246_v52 = vsel %vm2240_vm12, %v2237_v63, %v2082_v35 }
 0x115   : > { %v2110_v37 = vpop.permute.xlu1 %2109 }
 0x116   : > { %v2181_v1 = vpop.permute.xlu0 %2180  ;;  %v2255_v46 = vsel %vm2249_vm13, %v2246_v52, %v2110_v37 }
 0x117   : > { %v2280_v11 = vsel %vm2276_vm3, %v2271_v59, %v2181_v1  ;;  %v4069_v1 = vld [vmem:[%s4383_s2] ss:$0 sm:$0xff] }
 0x119   : > { %v2205_v41 = vpop.permute.xlu1 %2204 }
 0x11a   : > { %v2289_v51 = vsel %vm2285_vm4, %v2280_v11, %v2205_v41  ;;  %v2010_v8 = vpop.permute.xlu0 %2009 }
 0x11b   : > { %3176 = vmatmul.mubr.msk.f32.gmra.mxu0 %vm2310_vm5, %v2289_v51  ;;  %v2229_v16 = vsel %vm2222_vm10, %v3851_v47, %v2010_v8 }
 0x11d   : > { %v2059_v12 = vpop.permute.xlu1 %2058 }
 0x11e   : > { %v2135_v14 = vpop.permute.xlu0 %2134  ;;  %v2238_v22 = vsel %vm2231_vm11, %v2229_v16, %v2059_v12 }
 0x11f   : > { %v2263_v50 = vsel %vm2258_vm14, %v2254_v4, %v2135_v14 }
 0x121   : > { %v2159_v45 = vpop.permute.xlu1 %2158 }
 0x122   : > { %v2272_v34 = vsel %vm2267_vm15, %v2263_v50, %v2159_v45 }
 0x127   : > { %v2084_v15 = vpop.permute.xlu1 %2083 }
 0x128   : > { %v2247_v28 = vsel %vm2240_vm12, %v2238_v22, %v2084_v15 }
 0x12a   : > { %v2012_v25 = vpop.permute.xlu0 %2011 }
 0x12b   : > { %v2183_v39 = vpop.permute.xlu1 %2182  ;;  %v2230_v23 = vsel %vm2222_vm10, %v3906_v3, %v2012_v25 }
 0x12c   : > { %v2281_v32 = vsel %vm2276_vm3, %v2272_v34, %v2183_v39 }
 0x12e   : > { %v2137_v17 = vpop.permute.xlu0 %2136 }
 0x12f   : > { %v2112_v27 = vpop.permute.xlu1 %2111  ;;  %v2264_v54 = vsel %vm2258_vm14, %v2255_v46, %v2137_v17 }
 0x130   : > { %v2256_v30 = vsel %vm2249_vm13, %v2247_v28, %v2112_v27 }
 0x132   : > { %v2061_v38 = vpop.permute.xlu0 %2060 }
 0x133   : > { %v2207_v53 = vpop.permute.xlu1 %2206  ;;  %v2239_v33 = vsel %vm2231_vm11, %v2230_v23, %v2061_v38 }
 0x134   : > { %v2290_v9 = vsel %vm2285_vm4, %v2281_v32, %v2207_v53 }
 0x135   : > { %3178 = vmatprep.mubr.msk.f32.mxu0 %vm2310_vm5, %v2290_v9 }
 0x136   : > { %v2161_v21 = vpop.permute.xlu0 %2160 }
 0x137   : > { %v2139_v40 = vpop.permute.xlu1 %2138  ;;  %v2273_v60 = vsel %vm2267_vm15, %v2264_v54, %v2161_v21 }
 0x138   : > { %v2265_v3 = vsel %vm2258_vm14, %v2256_v30, %v2139_v40 }
 0x13c   : > { %v2086_v19 = vpop.permute.xlu0 %2085 }
 0x13d   : > { %v2248_v56 = vsel %vm2240_vm12, %v2239_v33, %v2086_v19 }
 0x13f   : > { %v2141_v58 = vpop.permute.xlu1 %2140 }
 0x140   : > { %v2185_v6 = vpop.permute.xlu0 %2184 }
 0x141   : > { %v2282_v2 = vsel %vm2276_vm3, %v2273_v60, %v2185_v6 }
 0x143   : > { %v4032_v62 = vpop.permute.xlu1 %2164 }
 0x144   : > { %v2114_v49 = vpop.permute.xlu0 %2113 }
 0x145   : > { %v2257_v61 = vsel %vm2249_vm13, %v2248_v56, %v2114_v49 }
 0x146   : > { %v2266_v7 = vsel %vm2258_vm14, %v2257_v61, %v2141_v58 }
 0x147   : > { %v4039_v57 = vpop.permute.xlu1 %2188  ;;  %v2275_v47 = vsel %vm2267_vm15, %v2266_v7, %v4032_v62 }
 0x148   : > { %v2209_v24 = vpop.permute.xlu0 %2208  ;;  %v2284_v20 = vsel %vm2276_vm3, %v2275_v47, %v4039_v57 }
 0x149   : > { %v2291_v10 = vsel %vm2285_vm4, %v2282_v2, %v2209_v24 }
 0x14a   : > { %3179 = vmatmul.mubr.msk.f32.gmra.mxu0 %vm2310_vm5, %v2291_v10 }
 0x14b   : > { %v4052_v31 = vpop.permute.xlu1 %2212 }
 0x14c   : > { %v2163_v44 = vpop.permute.xlu0 %2162  ;;  %v2293_v48 = vsel %vm2285_vm4, %v2284_v20, %v4052_v31 }
 0x14d   : > { %v2274_v35 = vsel %vm2267_vm15, %v2265_v3, %v2163_v44 }
 0x150   : > { %v2187_v26 = vpop.permute.xlu0 %2186 }
 0x151   : > { %v2283_v36 = vsel %vm2276_vm3, %v2274_v35, %v2187_v26 }
 0x154   : > { %v2211_v37 = vpop.permute.xlu0 %2210 }
 0x155   : > { %v2292_v55 = vsel %vm2285_vm4, %v2283_v36, %v2211_v37 }
 0x156   : > { %3181 = vmatprep.mubr.msk.f32.mxu0 %vm2310_vm5, %v2292_v55 }
 0x157   : > { %3182 = vmatmul.mubr.msk.f32.gmra.mxu0 %vm2310_vm5, %v2293_v48 }
 0x1b4   : > { %v3174_v43 = vpop.f32.mrf.mxu0 }
 0x1b5   : > { %v2407_v59 = vadd.f32 %v3174_v43, %v4069_v1 }
 0x1b6   : > { %v4088_v29 = vpop.f32.mrf.mxu0 }
 0x1b7   : > { %v2441_v11 = vmax.f32 %v2407_v59, 0.0 }
 0x1b9   : > { %v2457_v41 = vrot.slane %v2441_v11, 7 }
 0x1bb   : > { %v4073_v51 = vsel %vm1937_vm0, 0.0, %v2457_v41  ;;  %v2481_v12 = vsel %vm1937_vm0, %v2457_v41, 0.0 }
 0x1bc   : > { %v2506_v8 = vrot.slane %v2481_v12, 1  ;;  %v2505_v45 = vrot.slane %v4073_v51, 1  ;;  %v2548_v14 = vrot.slane %v2481_v12, 2  ;;  %v2547_v25 = vrot.slane %v4073_v51, 2 }
 0x1be   : > { %v4078_v15 = vsel %vm1972_vm2, %v2505_v45, %v2506_v8  ;;  %v4084_v39 = vsel %vm2021_vm1, %v2547_v25, %v2548_v14 }
 0x1bf   : > { %2525 = vrot.lane.b32.xlu1 %v4078_v15, %s3353_s11 }
 0x1c3   : > { %2567 = vrot.lane.b32.xlu1 %v4084_v39, %s3352_s10 }
 0x1db   : > { %v3177_v5 = vpop.f32.mrf.mxu0 }
 0x1dc   : > { %v2417_v17 = vadd.f32 %v3177_v5, %v4069_v1 }
 0x1dd   : > { %v2411_v18 = vpop.f32.mrf.mxu0 }
 0x1de   : > { %v2443_v27 = vmax.f32 %v2417_v17, 0.0  ;;  %v2412_v4 = vadd.f32 %v4069_v1, %v2411_v18 }
 0x1e0   : > { %v2459_v50 = vrot.slane %v2443_v27, 7  ;;  %v2442_v34 = vmax.f32 %v2412_v4, 0.0  ;;  %v2402_v27 = vadd.f32 %v4069_v1, %v4088_v29 }
 0x1e2   : > { %v4093_v38 = vsel %vm1937_vm0, 0.0, %v2459_v50  ;;  %v2483_v32 = vsel %vm1937_vm0, %v2459_v50, 0.0  ;;  %v2458_v53 = vrot.slane %v2442_v34, 7 }
 0x1e3   : > { %v2554_v9 = vrot.slane %v2483_v32, 2  ;;  %2593 = vrot.lane.b32.xlu1 %v4093_v38, %s3354_s12  ;;  %v2553_v21 = vrot.slane %v4093_v38, 2  ;;  %v2512_v19 = vrot.slane %v2483_v32, 1  ;;  %v2511_v6 = vrot.slane %v4093_v38, 1 }
 0x1e4   : > { %v4103_v58 = vsel %vm1937_vm0, 0.0, %v2458_v53  ;;  %v2482_v60 = vsel %vm1937_vm0, %v2458_v53, 0.0 }
 0x1e5   : > { %v4100_v40 = vsel %vm2021_vm1, %v2553_v21, %v2554_v9  ;;  %v4111_v42 = vsel %vm1972_vm2, %v2511_v6, %v2512_v19  ;;  %v2509_v10 = vrot.slane %v2482_v60, 1  ;;  %v2508_v16 = vrot.slane %v4103_v58, 1 }
 0x1e6   : > { %2648 = vrot.lane.b32.xlu0 %v4100_v40, %s3357_s25  ;;  %v2551_v22 = vrot.slane %v2482_v60, 2  ;;  %v2550_v56 = vrot.slane %v4103_v58, 2  ;;  %v2440_v9 = vmax.f32 %v2402_v27, 0.0 }
 0x1e7   : > { %2591 = vrot.lane.b32.xlu1 %v4103_v58, %s3354_s12  ;;  %v4136_v26 = vsel %vm1972_vm2, %v2508_v16, %v2509_v10 }
 0x1e8   : > { %v4144_v3 = vsel %vm2021_vm1, %v2550_v56, %v2551_v22 }
 0x1eb   : > { %2529 = vrot.lane.b32.xlu1 %v4111_v42, %s3353_s11 }
 0x1ef   : > { %2571 = vrot.lane.b32.xlu1 %v4100_v40, %s3352_s10 }
 0x1f3   : > { %2621 = vrot.lane.b32.xlu1 %v4111_v42, %s3356_s16 }
 0x20a   : > { %v3180_v63 = vpop.f32.mrf.mxu0 }
 0x20b   : > { %v2427_v52 = vadd.f32 %v3180_v63, %v4069_v1 }
 0x20c   : > { %v2421_v49 = vpop.f32.mrf.mxu0 }
 0x20d   : > { %v2445_v46 = vmax.f32 %v2427_v52, 0.0  ;;  %v2422_v54 = vadd.f32 %v4069_v1, %v2421_v49  ;;  %v2456_v52 = vrot.slane %v2440_v9, 7 }
 0x20f   : > { %v2461_v2 = vrot.slane %v2445_v46, 7  ;;  %v2444_v24 = vmax.f32 %v2422_v54, 0.0 }
 0x211   : > { %v4123_v44 = vsel %vm1937_vm0, 0.0, %v2461_v2  ;;  %v2460_v23 = vrot.slane %v2444_v24, 7  ;;  %v2485_v33 = vsel %vm1937_vm0, %v2461_v2, 0.0  ;;  %v4193_v2 = vsel %vm1937_vm0, 0.0, %v2456_v52 }
 0x212   : > { %2674 = vrot.lane.b32.xlu0 %v4123_v44, %s3355_s13  ;;  %2597 = vrot.lane.b32.xlu1 %v4123_v44, %s3354_s12  ;;  %v2518_v28 = vrot.slane %v2485_v33, 1  ;;  %v2517_v30 = vrot.slane %v4123_v44, 1  ;;  %v2560_v7 = vrot.slane %v2485_v33, 2  ;;  %v2559_v35 = vrot.slane %v4123_v44, 2 }
 0x213   : > { %v4133_v61 = vsel %vm1937_vm0, 0.0, %v2460_v23  ;;  %v2484_v37 = vsel %vm1937_vm0, %v2460_v23, 0.0  ;;  %v2480_v24 = vsel %vm1937_vm0, %v2456_v52, 0.0  ;;  %v2502_v10 = vrot.slane %v4193_v2, 1 }
 0x214   : > { %v2519_v47 = vsel %vm1972_vm2, %v2517_v30, %v2518_v28  ;;  %v2561_v20 = vsel %vm2021_vm1, %v2559_v35, %v2560_v7  ;;  %v2515_v55 = vrot.slane %v2484_v37, 1  ;;  %v2514_v59 = vrot.slane %v4133_v61, 1 }
 0x215   : > { %v2557_v41 = vrot.slane %v2484_v37, 2  ;;  %v2556_v14 = vrot.slane %v4133_v61, 2  ;;  %v2503_v23 = vrot.slane %v2480_v24, 1  ;;  %v2544_v33 = vrot.slane %v4193_v2, 2 }
 0x216   : > { %2527 = vrot.lane.b32.xlu1 %v4136_v26, %s3353_s11  ;;  %2672 = vrot.lane.b32.xlu0 %v4133_v61, %s3355_s13  ;;  %v2516_v45 = vsel %vm1972_vm2, %v2514_v59, %v2515_v55  ;;  %v2545_v22 = vrot.slane %v2480_v24, 2 }
 0x217   : > { %v3183_v36 = vpop.f32.mrf.mxu0  ;;  %v2558_v5 = vsel %vm2021_vm1, %v2556_v14, %v2557_v41  ;;  %v2504_v56 = vsel %vm1972_vm2, %v2502_v10, %v2503_v23 }
 0x218   : > { %v2437_v48 = vadd.f32 %v3183_v36, %v4069_v1  ;;  %v2546_v30 = vsel %vm2021_vm1, %v2544_v33, %v2545_v22 }
 0x219   : > { %v2431_v11 = vpop.f32.mrf.mxu0 }
 0x21a   : > { %2569 = vrot.lane.b32.xlu1 %v4144_v3, %s3352_s10  ;;  %2533 = vrot.lane.b32.xlu0 %v2519_v47, %s3353_s11  ;;  %v2447_v43 = vmax.f32 %v2437_v48, 0.0  ;;  %v2432_v8 = vadd.f32 %v4069_v1, %v2431_v11 }
 0x21c   : > { %v2463_v12 = vrot.slane %v2447_v43, 7  ;;  %v2446_v25 = vmax.f32 %v2432_v8, 0.0 }
 0x21e   : > { %2619 = vrot.lane.b32.xlu1 %v4136_v26, %s3356_s16  ;;  %2575 = vrot.lane.b32.xlu0 %v2561_v20, %s3352_s10  ;;  %v2479_v17 = vsel %vm1937_vm0, 0.0, %v2463_v12  ;;  %v2462_v18 = vrot.slane %v2446_v25, 7  ;;  %v2487_v4 = vsel %vm1937_vm0, %v2463_v12, 0.0 }
 0x21f   : > { %v2613_v34 = vrot.slane %v2487_v4, 1  ;;  %v2612_v53 = vrot.slane %v2479_v17, 1  ;;  %v2640_v19 = vrot.slane %v2487_v4, 2  ;;  %v2639_v6 = vrot.slane %v2479_v17, 2 }
 0x220   : > { %v4178_v32 = vsel %vm1937_vm0, 0.0, %v2462_v18  ;;  %v2486_v49 = vsel %vm1937_vm0, %v2462_v18, 0.0  ;;  %vm3360_vm0 = vmmov 0  }
 0x221   : > { %v2614_v63 = vsel %vm1972_vm2, %v2612_v53, %v2613_v34  ;;  %v2563_v46 = vrot.slane %v2486_v49, 2  ;;  %v2641_v54 = vsel %vm2021_vm1, %v2639_v6, %v2640_v19  ;;  %v2562_v60 = vrot.slane %v4178_v32, 2  ;;  %3200 = vmatprep.mubr.msk.f32.mxu1 %vm3360_vm0, %v3350_v0 }
 0x222   : > { %2652 = vrot.lane.b32.xlu0 %v2561_v20, %s3357_s25  ;;  %2595 = vrot.lane.b32.xlu1 %v4133_v61, %s3354_s12  ;;  %v2521_v28 = vrot.slane %v2486_v49, 1  ;;  %v2520_v7 = vrot.slane %v4178_v32, 1 }
 0x223   : > { %v2564_v16 = vsel %vm2021_vm1, %v2562_v60, %v2563_v46 }
 0x226   : > { %2695 = vrot.lane.b32.xlu0 %v2519_v47, %s3358_s15  ;;  %2625 = vrot.lane.b32.xlu1 %v2519_v47, %s3356_s16  ;;  %v2522_v47 = vsel %vm1972_vm2, %v2520_v7, %v2521_v28 }
 0x22a   : > { %2716 = vrot.lane.b32.xlu0 %v2561_v20, %s3359_s8  ;;  %2531 = vrot.lane.b32.xlu1 %v2516_v45, %s3353_s11 }
 0x22e   : > { %2573 = vrot.lane.b32.xlu1 %v2558_v5, %s3352_s10  ;;  %2601 = vrot.lane.b32.xlu0 %v2479_v17, %s3354_s12 }
 0x231   : > { %v2526_v50 = vpop.permute.xlu1 %2525 }
 0x232   : > { %2623 = vrot.lane.b32.xlu1 %v2516_v45, %s3356_s16  ;;  %2678 = vrot.lane.b32.xlu0 %v2479_v17, %s3355_s13  ;;  %v2730_v1 = vsel %vm2222_vm10, %v4073_v51, %v2526_v50 }
 0x235   : > { %v2568_v29 = vpop.permute.xlu1 %2567 }
 0x236   : > { %2650 = vrot.lane.b32.xlu0 %v2558_v5, %s3357_s25  ;;  %2599 = vrot.lane.b32.xlu1 %v4178_v32, %s3354_s12  ;;  %v2737_v21 = vsel %vm2231_vm11, %v2730_v1, %v2568_v29 }
 0x23a   : > { %2693 = vrot.lane.b32.xlu0 %v2516_v45, %s3358_s15  ;;  %2629 = vrot.lane.b32.xlu1 %v2614_v63, %s3356_s16 }
 0x23e   : > { %2714 = vrot.lane.b32.xlu0 %v2558_v5, %s3359_s8  ;;  %2656 = vrot.lane.b32.xlu1 %v2641_v54, %s3357_s25 }
 0x242   : > { %2676 = vrot.lane.b32.xlu0 %v4178_v32, %s3355_s13  ;;  %2577 = vrot.lane.b32.xlu1 %v2564_v16, %s3352_s10 }
 0x246   : > { %2699 = vrot.lane.b32.xlu0 %v2614_v63, %s3358_s15  ;;  %2523 = vrot.lane.b32.xlu1 %v2504_v56, %s3353_s11 }
 0x24a   : > { %2720 = vrot.lane.b32.xlu0 %v2641_v54, %s3359_s8  ;;  %2565 = vrot.lane.b32.xlu1 %v2546_v30, %s3352_s10 }
 0x24e   : > { %2589 = vrot.lane.b32.xlu1 %v4073_v51, %s3354_s12  ;;  %2535 = vrot.lane.b32.xlu0 %v2522_v47, %s3353_s11 }
 0x252   : > { %2617 = vrot.lane.b32.xlu1 %v4078_v15, %s3356_s16  ;;  %2646 = vrot.lane.b32.xlu0 %v4144_v3, %s3357_s25 }
 0x255   : > { %v2594_v35 = vpop.permute.xlu1 %2593 }
 0x256   : > { %2644 = vrot.lane.b32.xlu1 %v4084_v39, %s3357_s25  ;;  %2670 = vrot.lane.b32.xlu0 %v4093_v38, %s3355_s13 }
 0x259   : > { %v2592_v20 = vpop.permute.xlu1 %2591 }
 0x25a   : > { %2587 = vrot.lane.b32.xlu1 %v4193_v2, %s3354_s12  ;;  %2691 = vrot.lane.b32.xlu0 %v4111_v42, %s3358_s15  ;;  %v2745_v36 = vsel %vm2240_vm12, %v2737_v21, %v2592_v20 }
 0x25d   : > { %v2530_v48 = vpop.permute.xlu1 %2529 }
 0x25e   : > { %2615 = vrot.lane.b32.xlu1 %v2504_v56, %s3356_s16  ;;  %2712 = vrot.lane.b32.xlu0 %v4100_v40, %s3359_s8  ;;  %v2732_v37 = vsel %vm2222_vm10, %v4093_v38, %v2530_v48  ;;  %v2792_v38 = vld [vmem:[%s4385_s4] sm:$0xff]  ;;  %v2649_v40 = vpop.permute.xlu0 %2648 }
 0x261   : > { %v2572_v55 = vpop.permute.xlu1 %2571 }
 0x262   : > { %2642 = vrot.lane.b32.xlu1 %v2546_v30, %s3357_s25  ;;  %2627 = vrot.lane.b32.xlu0 %v2522_v47, %s3356_s16  ;;  %v2739_v43 = vsel %vm2231_vm11, %v2732_v37, %v2572_v55  ;;  %s215_s16 = sand.u32 1, %s3340_s19  }
 0x263   : > { %s2898_s14 = scalar_lea.sflag [#allocation3], %s215_s16 }
 0x265   : > { %v2622_v42 = vpop.permute.xlu1 %2621 }
 0x266   : > { %2687 = vrot.lane.b32.xlu1 %v4078_v15, %s3358_s15  ;;  %2654 = vrot.lane.b32.xlu0 %v2564_v16, %s3357_s25  ;;  %v3361_v15 = vmov 0   ;;  %s2974_s25 = sshll.u32 %s215_s16, 3 }
 0x267   : > { %3254 = vset.pattern.permute.xlu1 %v3361_v15  ;;  %3255 = vset.pattern.permute.xlu0 %v3361_v15  ;;  %s217_s26 = scalar_lea.vmem [#allocation2], %s2974_s25 }
 0x268   : > { %s2911_s30 = sshll.u32 %s217_s26, 4  ;;  %s2912_s30 = int_to_ptr.vmem [resolvable:$true] %s2911_s30 }
 0x269   : > { %s3288_s17 = scalar_lea.vmem %s2912_s30, 128 }
 0x26a   : > { %2697 = vrot.lane.b32.xlu0 %v2522_v47, %s3358_s15  ;;  %2795 = vperm.xlu1 %3254, %v2792_v38   ;;  %p3289_p11 = scmp.ne.s32.totalorder %s2912_s30, %s3288_s17 }
 0x26c   : > { %p3290_p12 = pnand %p3289_p11, %p3431_p5 }
 0x26e   : > { %2718 = vrot.lane.b32.xlu0 %v2564_v16, %s3359_s8  ;;  %p3291_p13 = pneg %p3290_p12 }
 0x272   : > { %2668 = vrot.lane.b32.xlu0 %v4103_v58, %s3355_s13 }
 0x276   : > { %2689 = vrot.lane.b32.xlu0 %v4136_v26, %s3358_s15  ;;  %s3124_s15 = sshll.u32 %s3414_s22, 7  ;;  %s3292_s22 = sshll.u32 %s3362_s9, 4  ;;  %s3293_s22 = int_to_ptr.vmem [resolvable:$false] %s3292_s22 }
 0x277   : > { %s3294_s23 = scalar_lea.vmem %s3293_s22, 256  ;;  %p3295_p0 = scmp.lt.s32.totalorder %s2912_s30, %s3293_s22 }
 0x278   : > { %p3296_p1 = scmp.lt.s32.totalorder %s3294_s23, %s3288_s17 }
 0x27a   : > { %2710 = vrot.lane.b32.xlu0 %v4144_v3, %s3359_s8  ;;  %p3297_p2 = por %p3296_p1, %p3295_p0 }
 0x27c   : > { %p3298_p3 = pnand %p3297_p2, %p3291_p13 }
 0x27e   : > { %2666 = vrot.lane.b32.xlu0 %v4073_v51, %s3355_s13 }
 0x282   : > { %2708 = vrot.lane.b32.xlu0 %v4084_v39, %s3359_s8  ;;  %s2909_s8 = scalar_lea.hbm %s4386_s5, %s3124_s15 }
 0x284   : > { %v2598_v26 = vpop.permute.xlu1 %2597  ;;  %v2675_v59 = vpop.permute.xlu0 %2674 }
 0x288   : > { %v2528_v11 = vpop.permute.xlu1 %2527  ;;  %v2673_v41 = vpop.permute.xlu0 %2672 }
 0x289   : > { %v2731_v12 = vsel %vm2222_vm10, %v4103_v58, %v2528_v11 }
 0x28c   : > { %v2570_v3 = vpop.permute.xlu1 %2569  ;;  %v2534_v8 = vpop.permute.xlu0 %2533 }
 0x28d   : > { %v2738_v45 = vsel %vm2231_vm11, %v2731_v12, %v2570_v3  ;;  %v2734_v25 = vsel %vm2222_vm10, %v4123_v44, %v2534_v8 }
 0x28e   : > { %v2746_v14 = vsel %vm2240_vm12, %v2738_v45, %v2594_v35 }
 0x28f   : > { %v2754_v51 = vsel %vm2249_vm13, %v2746_v14, %v2622_v42 }
 0x290   : > { %v2620_v5 = vpop.permute.xlu1 %2619  ;;  %v2576_v39 = vpop.permute.xlu0 %2575  ;;  %v2762_v17 = vsel %vm2258_vm14, %v2754_v51, %v2649_v40 }
 0x291   : > { %v4264_v18 = vsel %vm2249_vm13, %v2745_v36, %v2620_v5  ;;  %v2741_v58 = vsel %vm2231_vm11, %v2734_v25, %v2576_v39  ;;  %v4268_v27 = vsel %vm2267_vm15, %v2762_v17, %v2673_v41 }
 0x294   : > { %v2596_v4 = vpop.permute.xlu1 %2595  ;;  %v2653_v50 = vpop.permute.xlu0 %2652 }
 0x295   : > { %v2747_v54 = vsel %vm2240_vm12, %v2739_v43, %v2596_v4 }
 0x298   : > { %v2626_v34 = vpop.permute.xlu1 %2625  ;;  %v2696_v53 = vpop.permute.xlu0 %2695 }
 0x29c   : > { %v2532_v9 = vpop.permute.xlu1 %2531  ;;  %v2717_v1 = vpop.permute.xlu0 %2716 }
 0x29d   : > { %v2733_v44 = vsel %vm2222_vm10, %v4133_v61, %v2532_v9 }
 0x2a0   : > { %v2574_v29 = vpop.permute.xlu1 %2573  ;;  %v2602_v21 = vpop.permute.xlu0 %2601 }
 0x2a1   : > { %v2740_v19 = vsel %vm2231_vm11, %v2733_v44, %v2574_v29 }
 0x2a2   : > { %v2748_v6 = vsel %vm2240_vm12, %v2740_v19, %v2598_v26 }
 0x2a3   : > { %v2756_v63 = vsel %vm2249_vm13, %v2748_v6, %v2626_v34 }
 0x2a4   : > { %v2679_v52 = vpop.permute.xlu0 %2678  ;;  %v2764_v49 = vsel %vm2258_vm14, %v2756_v63, %v2653_v50  ;;  %v2624_v46 = vpop.permute.xlu1 %2623 }
 0x2a5   : > { %v2755_v60 = vsel %vm2249_vm13, %v2747_v54, %v2624_v46 }
 0x2a8   : > { %v2651_v24 = vpop.permute.xlu0 %2650  ;;  %v2600_v23 = vpop.permute.xlu1 %2599 }
 0x2a9   : > { %v2763_v10 = vsel %vm2258_vm14, %v2755_v60, %v2651_v24  ;;  %v2749_v14 = vsel %vm2240_vm12, %v2741_v58, %v2600_v23 }
 0x2aa   : > { %v2771_v61 = vsel %vm2267_vm15, %v2763_v10, %v2675_v59 }
 0x2ab   : > { %v2779_v16 = vsel %vm2276_vm3, %v2771_v61, %v2696_v53 }
 0x2ac   : > { %v2694_v33 = vpop.permute.xlu0 %2693  ;;  %v2787_v22 = vsel %vm2285_vm4, %v2779_v16, %v2717_v1  ;;  %v2630_v28 = vpop.permute.xlu1 %2629 }
 0x2ad   : > { %v2778_v44 = vsel %vm2276_vm3, %v4268_v27, %v2694_v33 }
 0x2b0   : > { %v2715_v56 = vpop.permute.xlu0 %2714  ;;  %v2657_v7 = vpop.permute.xlu1 %2656 }
 0x2b4   : > { %v2677_v30 = vpop.permute.xlu0 %2676  ;;  %v2578_v20 = vpop.permute.xlu1 %2577 }
 0x2b5   : > { %v2772_v4 = vsel %vm2267_vm15, %v2764_v49, %v2677_v30 }
 0x2b8   : > { %v2700_v47 = vpop.permute.xlu0 %2699  ;;  %v2524_v55 = vpop.permute.xlu1 %2523 }
 0x2b9   : > { %v2729_v19 = vsel %vm2222_vm10, %v4193_v2, %v2524_v55 }
 0x2bc   : > { %v2721_v35 = vpop.permute.xlu0 %2720  ;;  %v2566_v11 = vpop.permute.xlu1 %2565 }
 0x2bd   : > { %v2736_v63 = vsel %vm2231_vm11, %v2729_v19, %v2566_v11 }
 0x2c0   : > { %v2536_v36 = vpop.permute.xlu0 %2535  ;;  %v2590_v12 = vpop.permute.xlu1 %2589 }
 0x2c1   : > { %v2735_v48 = vsel %vm2222_vm10, %v4178_v32, %v2536_v36  ;;  %v2744_v49 = vsel %vm2240_vm12, %v2736_v63, %v2590_v12 }
 0x2c2   : > { %v2742_v37 = vsel %vm2231_vm11, %v2735_v48, %v2578_v20 }
 0x2c3   : > { %v2750_v43 = vsel %vm2240_vm12, %v2742_v37, %v2602_v21  ;;  %v2786_v21 = vsel %vm2285_vm4, %v2778_v44, %v2715_v56 }
 0x2c4   : > { %v2758_v38 = vsel %vm2249_vm13, %v2750_v43, %v2630_v28  ;;  %v2647_v15 = vpop.permute.xlu0 %2646  ;;  %v2618_v45 = vpop.permute.xlu1 %2617 }
 0x2c5   : > { %v2766_v40 = vsel %vm2258_vm14, %v2758_v38, %v2657_v7  ;;  %v2761_v6 = vsel %vm2258_vm14, %v4264_v18, %v2647_v15  ;;  %v2752_v54 = vsel %vm2249_vm13, %v2744_v49, %v2618_v45 }
 0x2c6   : > { %v2774_v42 = vsel %vm2267_vm15, %v2766_v40, %v4032_v62 }
 0x2c7   : > { %v2782_v26 = vsel %vm2276_vm3, %v2774_v42, %v4039_v57 }
 0x2c8   : > { %v2671_v59 = vpop.permute.xlu0 %2670  ;;  %v2790_v32 = vsel %vm2285_vm4, %v2782_v26, %v4052_v31  ;;  %v2645_v31 = vpop.permute.xlu1 %2644 }
 0x2c9   : > { %3185 = vmatpush3.xpose.msk.msra.mxu1 %vm2310_vm5, %v2790_v32  ;;  %v2760_v18 = vsel %vm2258_vm14, %v2752_v54, %v2645_v31 }
 0x2ca   : > { %3186 = vmatprep.subr.mxu1 %v3350_v0 }
 0x2cc   : > { %v2692_v41 = vpop.permute.xlu0 %2691  ;;  %v2588_v34 = vpop.permute.xlu1 %2587 }
 0x2cd   : > { %v2743_v24 = vsel %vm2240_vm12, %v3975_v13, %v2588_v34 }
 0x2d0   : > { %v2713_v3 = vpop.permute.xlu0 %2712  ;;  %v2616_v1 = vpop.permute.xlu1 %2615 }
 0x2d1   : > { %v2751_v10 = vsel %vm2249_vm13, %v2743_v24, %v2616_v1 }
 0x2d4   : > { %v2628_v8 = vpop.permute.xlu0 %2627  ;;  %v2643_v60 = vpop.permute.xlu1 %2642 }
 0x2d5   : > { %v2757_v62 = vsel %vm2249_vm13, %v2749_v14, %v2628_v8  ;;  %v2759_v23 = vsel %vm2258_vm14, %v2751_v10, %v2643_v60 }
 0x2d8   : > { %v2655_v51 = vpop.permute.xlu0 %2654  ;;  %v2688_v13 = vpop.permute.xlu1 %2687 }
 0x2d9   : > { %v2765_v57 = vsel %vm2258_vm14, %v2757_v62, %v2655_v51 }
 0x2da   : > { %v2773_v25 = vsel %vm2267_vm15, %v2765_v57, %v2679_v52  ;;  %v2769_v52 = vsel %vm2267_vm15, %v2761_v6, %v2671_v59 }
 0x2db   : > { %v2781_v5 = vsel %vm2276_vm3, %v2773_v25, %v2700_v47  ;;  %v2777_v27 = vsel %vm2276_vm3, %v2769_v52, %v2692_v41  ;;  %v2791_v47 = vld [vmem:[%s4384_s3] sm:$0xff] }
 0x2dc   : > { %v2698_v39 = vpop.permute.xlu0 %2697  ;;  %v2789_v17 = vsel %vm2285_vm4, %v2781_v5, %v2721_v35  ;;  %v2785_v2 = vsel %vm2285_vm4, %v2777_v27, %v2713_v3 }
 0x2dd   : > { %3187 = vmatpush3.xpose.msk.msra.mxu1 %vm2310_vm5, %v2789_v17  ;;  %v2780_v58 = vsel %vm2276_vm3, %v2772_v4, %v2698_v39 }
 0x2de   : > { %3188 = vmatprep.subr.mxu1 %v3350_v0 }
 0x2e0   : > { %v2719_v50 = vpop.permute.xlu0 %2718 }
 0x2e1   : > { %v2788_v53 = vsel %vm2285_vm4, %v2780_v58, %v2719_v50 }
 0x2e2   : > { %3189 = vmatpush3.xpose.msk.msra.mxu1 %vm2310_vm5, %v2788_v53 }
 0x2e3   : > { %3190 = vmatprep.subr.mxu1 %v3350_v0 }
 0x2e4   : > { %v2669_v9 = vpop.permute.xlu0 %2668 }
 0x2e5   : > { %v2768_v61 = vsel %vm2267_vm15, %v2760_v18, %v2669_v9  ;;  %v2796_v35 = vpop.permute.xlu1 %2795 }
 0x2e6   : > { %3191 = vmatpush3.xpose.msk.msra.mxu1 %vm2310_vm5, %v2787_v22 }
 0x2e7   : > { %3192 = vmatprep.subr.mxu1 %v3350_v0 }
 0x2e8   : > { %v2690_v29 = vpop.permute.xlu0 %2689 }
 0x2e9   : > { %v2776_v16 = vsel %vm2276_vm3, %v2768_v61, %v2690_v29 }
 0x2ea   : > { %3193 = vmatpush3.xpose.msk.msra.mxu1 %vm2310_vm5, %v2786_v21 }
 0x2eb   : > { %3194 = vmatprep.subr.mxu1 %v3350_v0 }
 0x2ec   : > { %v2711_v46 = vpop.permute.xlu0 %2710 }
 0x2ed   : > { %v2784_v22 = vsel %vm2285_vm4, %v2776_v16, %v2711_v46 }
 0x2ee   : > { %3195 = vmatpush3.xpose.msk.msra.mxu1 %vm2310_vm5, %v2785_v2 }
 0x2ef   : > { %3196 = vmatprep.subr.mxu1 %v3350_v0 }
 0x2f0   : > { %v2667_v33 = vpop.permute.xlu0 %2666 }
 0x2f1   : > { %v2767_v56 = vsel %vm2267_vm15, %v2759_v23, %v2667_v33 }
 0x2f2   : > { %3197 = vmatpush3.xpose.msk.msra.mxu1 %vm2310_vm5, %v2784_v22  ;;  %v2775_v28 = vsel %vm2276_vm3, %v2767_v56, %v2688_v13 }
 0x2f3   : > { %3198 = vmatprep.subr.mxu1 %v3350_v0 }
 0x2f4   : > { %v2709_v30 = vpop.permute.xlu0 %2708 }
 0x2f5   : > { %v2783_v7 = vsel %vm2285_vm4, %v2775_v28, %v2709_v30 }
 0x2f6   : > { %3199 = vmatpush3.xpose.msk.msra.mxu1 %vm2310_vm5, %v2783_v7 }
 0x2f9   : > { %3201 = vmatmul.mubr.msk.f32.vlgmr.msra.gmra.mxu1 %vm2310_vm5, %v2791_v47 }
 0x3b9   : > { %v2891_v20 = vpop.f32.mrf.mxu1 }
 0x3ba   : > { %v2892_v0 = vadd.f32 %v2891_v20, %v2796_v35 }
 0x3bb   : > { %v3202_v36 = vpop.f32.mrf.mxu1 }
 0x3bc   : > { %v2895_v48 = vmax.f32 %v2892_v0, 0.0 }
 0x3be   : > { %2896 = vst.msk [vmem:[%s217_s26] sm:$0xff] %vm2285_vm4, %v2895_v48 }
 0x3bf   : > { %3301 = shalt.err (!%p3298_p3)
}
 0x3c0   : > { %s3302_s10 = scalar_lea.hbm %s2909_s8, 128  ;;  %s3306_s13 = scalar_lea.hbm %s4386_s5, 256 }
 0x3c1   : > { %p3303_p4 = scmp.ne.s32.totalorder %s2909_s8, %s3302_s10  ;;  %p3307_p9 = scmp.lt.s32.totalorder %s2909_s8, %s4386_s5 }
 0x3c2   : > { %p3308_p10 = scmp.lt.s32.totalorder %s3306_s13, %s3302_s10 }
 0x3c3   : > { %p3304_p7 = pnand %p3303_p4, %p3431_p5 }
 0x3c4   : > { %p3309_p11 = por %p3308_p10, %p3307_p9 }
 0x3c5   : > { %p3305_p8 = pneg %p3304_p7 }
 0x3c7   : > { %p3310_p12 = pnand %p3309_p11, %p3305_p8 }
 0x3c9   : > { %3313 = shalt.err (!%p3310_p12)
}
 0x3ca   : > { %3203 = dma.vmem_to_hbm [thread:$0]  (%p3431_p5), %s2912_s30, 128, %s2909_s8, %s2898_s14  }
 0x3cb PF: > { %p3209_p13 = scmp.ge.s32.totalorder %s3348_s21, 2  ;;  %s2923_s15 = sand.u32 1, %s3336_s18  }
 0x3cc   : > { %s2924_s26 = scalar_lea.sflag [#allocation3], %s2923_s15 }
 0x3cd   : > { %p3206_p0 = pnand %p3209_p13, %p3435_p6 }
 0x3cf   : > { %p3207_p1 = pneg %p3206_p0 }
 0x3d1   : > { %3331 = dma.done.wait (%p3207_p1), %s2924_s26, 128  }
 0x3d2   : > { %3333 = vsyncadd (%p3207_p1), %s2924_s26, 4294967168  ;;  %p15_p2 = scmp.ge.s32.totalorder %s3418_s24, 4   ;;  %s4389_s18 = smov %s3340_s19 }
 0x3d3   : > { %s4390_s19 = smov %s3344_s20  ;;  %s4391_s20 = smov %s3429_s27 }
 0x3d4   : > { %s4392_s21 = smov %s3418_s24  ;;  %17 = sbr.rel (!%p15_p2) target bundleno = 3 (0x3), region = 75 }
 0x3d9   :  { %2929 = vsyncpa [#allocation3], 1 }
 0x3da   :  { %2931 = vsyncpa [#allocation3 + $0x1], 1 }

</bundles_post_ra>
